<compile_context>
chip_gen: v7x
topology: tpu7x:2x2x1
jax: 0.10.0
libtpu: 0.0.40
codegen_flags: <defaults>
</compile_context>

<pallas_src>
import functools

import jax
import jax.numpy as jnp
from jax import lax
from jax.experimental import pallas as pl
from jax.experimental.pallas import tpu as pltpu


# ---------------------------------------------------------------------------
# Fused MBConv kernel (one image per grid step)
# ---------------------------------------------------------------------------

def _mbconv_kernel(x_ref, we_ref, se_ref, be_ref, wd_ref, sd_ref, bd_ref,
                   wr_ref, br_ref, wx_ref, bx_ref, wp_ref, sp_ref, bp_ref,
                   o_ref, ypad_ref, *, H, W, stride, skip, off):
    """expand -> dw3x3 -> SE -> project [+ residual] for one image.

    Layout: channels on sublanes, flattened spatial (H*W) on lanes.
    """
    f32 = jnp.float32
    HW = H * W
    Cexp = we_ref.shape[0]

    x = x_ref[...]                                               # (Cin, H*W) f32

    # --- expand 1x1 conv + folded BN + SiLU (bf16 MXU operands, f32 acc) -----
    y = jnp.dot(we_ref[...].astype(jnp.bfloat16), x.astype(jnp.bfloat16),
                preferred_element_type=f32)                      # (Cexp, H*W)
    y = y * se_ref[...] + be_ref[...]
    y = y * jax.nn.sigmoid(y)                                    # SiLU

    # --- depthwise 3x3 conv (padding = 1) ------------------------------------
    # Write y once into a lane-padded VMEM scratch (tile-aligned stores), then
    # read the nine taps as static lane-offset windows.  Out-of-image rows land
    # on the zero halo; the per-row W wrap-around is masked with a column iota.
    ypad_ref[:, 0:off] = jnp.zeros((Cexp, off), f32)
    ypad_ref[:, off + HW:2 * off + HW] = jnp.zeros((Cexp, off), f32)
    ypad_ref[:, off:off + HW] = y

    col = lax.broadcasted_iota(jnp.int32, (1, HW), 1) % W        # column index j
    mask_l = (col >= 1).astype(f32)                              # tap dw == -1
    mask_r = (col <= W - 2).astype(f32)                          # tap dw == +1

    acc = jnp.zeros((Cexp, HW), f32)
    for kh in range(3):
        for kw in range(3):
            dh, dw = kh - 1, kw - 1
            start = off + dh * W + dw
            win = ypad_ref[:, start:start + HW]                  # (Cexp, H*W)
            if dw == -1:
                win = win * mask_l
            elif dw == 1:
                win = win * mask_r
            acc = acc + win * wd_ref[:, kh * 3 + kw:kh * 3 + kw + 1]

    if stride != 1:
        # TODO(synk): stride != 1 is functional but unoptimized: it computes the
        # dense (stride-1) conv and gathers strided positions with a 0/1 matmul.
        Ho = (H + 2 - 3) // stride + 1
        Wo = (W + 2 - 3) // stride + 1
        p = lax.broadcasted_iota(jnp.int32, (HW, Ho * Wo), 0)
        q = lax.broadcasted_iota(jnp.int32, (HW, Ho * Wo), 1)
        sel = (p == (q // Wo) * (stride * W) + (q % Wo) * stride).astype(f32)
        acc = jnp.dot(acc, sel, preferred_element_type=f32)      # (Cexp, Ho*Wo)

    yd = acc * sd_ref[...] + bd_ref[...]
    yd = yd * jax.nn.sigmoid(yd)                                 # SiLU

    # --- Squeeze-and-Excite (global mean over the spatial lanes) -------------
    m = jnp.sum(yd, axis=1, keepdims=True) * (1.0 / yd.shape[1])  # (Cexp, 1)
    z = jnp.dot(wr_ref[...], m, preferred_element_type=f32) + br_ref[...]
    z = z * jax.nn.sigmoid(z)                                    # (Csq, 1)
    g = jnp.dot(wx_ref[...], z, preferred_element_type=f32) + bx_ref[...]
    g = jax.nn.sigmoid(g)                                        # (Cexp, 1)
    yg = yd * g

    # --- project 1x1 conv + folded BN (identity act) [+ fused residual] ------
    out = jnp.dot(wp_ref[...].astype(jnp.bfloat16), yg.astype(jnp.bfloat16),
                  preferred_element_type=f32)                    # (Cout, Ho*Wo)
    out = out * sp_ref[...] + bp_ref[...]
    if skip:
        out = out + x          # stochastic_depth == identity in eval mode
    o_ref[...] = out.astype(o_ref.dtype)


# ---------------------------------------------------------------------------
# Wrapper (NCHW in / NCHW out, like the PyTorch module)
# ---------------------------------------------------------------------------

def mbconv_forward(x_nchw, params, *, stride=1, skip_connection=True):
    N, Cin, H, W = x_nchw.shape
    HW = H * W
    Cexp = params['w_exp'].shape[1]
    Cout = params['w_proj'].shape[1]
    Ho = (H + 2 - 3) // stride + 1
    Wo = (W + 2 - 3) // stride + 1
    off = 128 * (-(-(W + 1) // 128))         # lane-tile-aligned halo >= W + 1

    f32 = jnp.float32
    x_flat = x_nchw.astype(f32).reshape(N, Cin, HW)              # NCHW -> (N,C,HW)

    as_col = lambda v: v.reshape(-1, 1).astype(f32)
    args = [
        x_flat,
        params['w_exp'].T.astype(f32),                           # (Cexp, Cin)
        as_col(params['s_exp']), as_col(params['b_exp']),
        params['w_dw'].reshape(9, Cexp).T.astype(f32),           # (Cexp, 9)
        as_col(params['s_dw']), as_col(params['b_dw']),
        params['w_se_r'].T.astype(f32),                          # (Csq, Cexp)
        as_col(params['b_se_r']),
        params['w_se_e'].T.astype(f32),                          # (Cexp, Csq)
        as_col(params['b_se_e']),
        params['w_proj'].T.astype(f32),                          # (Cout, Cexp)
        as_col(params['s_proj']), as_col(params['b_proj']),
    ]

    def _const_spec(a):
        zeros = (0,) * a.ndim
        return pl.BlockSpec(a.shape, lambda n: zeros)

    in_specs = ([pl.BlockSpec((None, Cin, HW), lambda n: (n, 0, 0))]
                + [_const_spec(a) for a in args[1:]])

    kernel = functools.partial(_mbconv_kernel, H=H, W=W, stride=stride,
                               skip=skip_connection, off=off)

    out_flat = pl.pallas_call(
        kernel,
        out_shape=jax.ShapeDtypeStruct((N, Cout, Ho * Wo), f32),
        grid=(N,),
        in_specs=in_specs,
        out_specs=pl.BlockSpec((None, Cout, Ho * Wo), lambda n: (n, 0, 0)),
        scratch_shapes=[pltpu.VMEM((Cexp, 2 * off + HW), f32)],
        compiler_params=pltpu.CompilerParams(dimension_semantics=("parallel",)),
    )(*args)
    return out_flat.reshape(N, Cout, Ho, Wo)                     # NCHW


# ---------------------------------------------------------------------------
# Pure-JAX reference (same parameterization) for correctness check
# ---------------------------------------------------------------------------

def ref_mbconv(x_nchw, params, *, stride=1, skip_connection=True):
    x = jnp.transpose(x_nchw, (0, 2, 3, 1)).astype(jnp.float32)
    silu = lambda v: v * jax.nn.sigmoid(v)

    y = jnp.einsum('nhwc,cd->nhwd', x, params['w_exp'])
    y = silu(y * params['s_exp'] + params['b_exp'])

    C = y.shape[-1]
    y = lax.conv_general_dilated(
        y, params['w_dw'][:, :, None, :],
        window_strides=(stride, stride), padding=((1, 1), (1, 1)),
        dimension_numbers=('NHWC', 'HWIO', 'NHWC'),
        feature_group_count=C)
    y = silu(y * params['s_dw'] + params['b_dw'])

    s = jnp.mean(y, axis=(1, 2))                                  # (N, C)
    z = silu(s @ params['w_se_r'] + params['b_se_r'])
    g = jax.nn.sigmoid(z @ params['w_se_e'] + params['b_se_e'])
    y = y * g[:, None, None, :]

    out = jnp.einsum('nhwc,cd->nhwd', y, params['w_proj'])
    out = out * params['s_proj'] + params['b_proj']
    if skip_connection:
        out = out + x                                             # eval: identity drop
    return jnp.transpose(out, (0, 3, 1, 2))


# ---------------------------------------------------------------------------
# Main
# ---------------------------------------------------------------------------

if __name__ == "__main__":
    # MBConv(in_planes=8, out_planes=8, expand_ratio=4, stride=1, drop_rate=0.2)
    in_planes, out_planes, expand_ratio, stride = 8, 8, 4, 1
    N, H, W = 2, 16, 16
    Cexp = in_planes * expand_ratio          # 32
    Csq = int(in_planes * 0.25)              # 2

    key = jax.random.PRNGKey(0)
    ks = jax.random.split(key, 12)

    def rnd(k, shape, scale=0.2):
        return scale * jax.random.normal(k, shape, jnp.float32)

    def bn_fold(k, C):
        kg, kb, km, kv = jax.random.split(k, 4)
        gamma = 1.0 + 0.1 * jax.random.normal(kg, (C,), jnp.float32)
        beta = 0.1 * jax.random.normal(kb, (C,), jnp.float32)
        mean = 0.1 * jax.random.normal(km, (C,), jnp.float32)
        var = jnp.abs(jax.random.normal(kv, (C,), jnp.float32)) + 0.5
        scale = gamma / jnp.sqrt(var + 1e-5)   # eval-mode folded BN
        bias = beta - mean * scale
        return scale, bias

    s_exp, b_exp = bn_fold(ks[0], Cexp)
    s_dw, b_dw = bn_fold(ks[1], Cexp)
    s_proj, b_proj = bn_fold(ks[2], out_planes)

    params = dict(
        w_exp=rnd(ks[3], (in_planes, Cexp)),      # 1x1 expand conv  (Cin, Cexp)
        s_exp=s_exp, b_exp=b_exp,
        w_dw=rnd(ks[4], (3, 3, Cexp)),            # depthwise 3x3    (kh, kw, C)
        s_dw=s_dw, b_dw=b_dw,
        w_se_r=rnd(ks[5], (Cexp, Csq)),           # SE reduce 1x1 conv
        b_se_r=rnd(ks[6], (Csq,)),
        w_se_e=rnd(ks[7], (Csq, Cexp)),           # SE expand 1x1 conv
        b_se_e=rnd(ks[8], (Cexp,)),
        w_proj=rnd(ks[9], (Cexp, out_planes)),    # 1x1 project conv (Cexp, Cout)
        s_proj=s_proj, b_proj=b_proj,
    )

    x = jax.random.normal(ks[10], (N, in_planes, H, W), jnp.float32)   # NCHW

    skip = (stride == 1 and in_planes == out_planes)
    fwd = jax.jit(functools.partial(mbconv_forward, stride=stride,
                                    skip_connection=skip))
    ref_fn = jax.jit(functools.partial(ref_mbconv, stride=stride,
                                       skip_connection=skip))

    out = jax.block_until_ready(fwd(x, params))
    ref = jax.block_until_ready(ref_fn(x, params))

    assert out.shape == (N, out_planes, H, W), out.shape
    err = float(jnp.max(jnp.abs(out - ref)))
    assert jnp.allclose(out, ref, atol=2e-2, rtol=2e-2), f"max abs err {err}"
    print("KERNEL_OK")
</pallas_src>

<mosaic_0001>
module attributes {stable_mosaic.version = 11 : i64} {
  func.func @_mbconv_kernel(%arg0: i32, %arg1: memref<1x8x256xf32, #tpu.memory_space<vmem>>, %arg2: memref<32x8xf32, #tpu.memory_space<vmem>>, %arg3: memref<32x1xf32, #tpu.memory_space<vmem>>, %arg4: memref<32x1xf32, #tpu.memory_space<vmem>>, %arg5: memref<32x9xf32, #tpu.memory_space<vmem>>, %arg6: memref<32x1xf32, #tpu.memory_space<vmem>>, %arg7: memref<32x1xf32, #tpu.memory_space<vmem>>, %arg8: memref<2x32xf32, #tpu.memory_space<vmem>>, %arg9: memref<2x1xf32, #tpu.memory_space<vmem>>, %arg10: memref<32x2xf32, #tpu.memory_space<vmem>>, %arg11: memref<32x1xf32, #tpu.memory_space<vmem>>, %arg12: memref<8x32xf32, #tpu.memory_space<vmem>>, %arg13: memref<8x1xf32, #tpu.memory_space<vmem>>, %arg14: memref<8x1xf32, #tpu.memory_space<vmem>>, %arg15: memref<1x8x256xf32, #tpu.memory_space<vmem>>, %arg16: memref<32x512xf32, #tpu.memory_space<vmem>>) attributes {dimension_semantics = [#tpu.dimension_semantics<parallel>], iteration_bounds = array<i64: 2>, scalar_prefetch = 0 : i64, scratch_operands = 1 : i64, tpu.core_type = #tpu.core_type<tc>, window_params = [{transform_indices = @transform_0, window_bounds = array<i64: 1, 8, 256>}, {pipeline_mode = #tpu.pipeline_mode<synchronous>, transform_indices = @transform_1, window_bounds = array<i64: 32, 8>}, {pipeline_mode = #tpu.pipeline_mode<synchronous>, transform_indices = @transform_2, window_bounds = array<i64: 32, 1>}, {pipeline_mode = #tpu.pipeline_mode<synchronous>, transform_indices = @transform_3, window_bounds = array<i64: 32, 1>}, {pipeline_mode = #tpu.pipeline_mode<synchronous>, transform_indices = @transform_4, window_bounds = array<i64: 32, 9>}, {pipeline_mode = #tpu.pipeline_mode<synchronous>, transform_indices = @transform_5, window_bounds = array<i64: 32, 1>}, {pipeline_mode = #tpu.pipeline_mode<synchronous>, transform_indices = @transform_6, window_bounds = array<i64: 32, 1>}, {pipeline_mode = #tpu.pipeline_mode<synchronous>, transform_indices = @transform_7, window_bounds = array<i64: 2, 32>}, {pipeline_mode = #tpu.pipeline_mode<synchronous>, transform_indices = @transform_8, window_bounds = array<i64: 2, 1>}, {pipeline_mode = #tpu.pipeline_mode<synchronous>, transform_indices = @transform_9, window_bounds = array<i64: 32, 2>}, {pipeline_mode = #tpu.pipeline_mode<synchronous>, transform_indices = @transform_10, window_bounds = array<i64: 32, 1>}, {pipeline_mode = #tpu.pipeline_mode<synchronous>, transform_indices = @transform_11, window_bounds = array<i64: 8, 32>}, {pipeline_mode = #tpu.pipeline_mode<synchronous>, transform_indices = @transform_12, window_bounds = array<i64: 8, 1>}, {pipeline_mode = #tpu.pipeline_mode<synchronous>, transform_indices = @transform_13, window_bounds = array<i64: 8, 1>}, {transform_indices = @transform_14, window_bounds = array<i64: 1, 8, 256>}]} {
    %c0 = arith.constant 0 : index
    %c0_0 = arith.constant 0 : index
    %c0_1 = arith.constant 0 : index
    %0 = vector.load %arg1[%c0, %c0_0, %c0_1] : memref<1x8x256xf32, #tpu.memory_space<vmem>>, vector<1x8x256xf32>
    %1 = vector.shape_cast %0 : vector<1x8x256xf32> to vector<8x256xf32>
    %c0_2 = arith.constant 0 : index
    %c0_3 = arith.constant 0 : index
    %2 = vector.load %arg2[%c0_2, %c0_3] : memref<32x8xf32, #tpu.memory_space<vmem>>, vector<32x8xf32>
    %3 = arith.truncf %2 : vector<32x8xf32> to vector<32x8xbf16>
    %4 = arith.truncf %1 : vector<8x256xf32> to vector<8x256xbf16>
    %cst = arith.constant dense<0.000000e+00> : vector<32x256xf32>
    %5 = tpu.matmul %3, %4, %cst {dimension_numbers = #tpu.dot_dimension_numbers<[1], [0], [0], [1], [0, 0, 1, 1], [], []>} : vector<32x8xbf16>, vector<8x256xbf16>, vector<32x256xf32> -> vector<32x256xf32>
    %c0_4 = arith.constant 0 : index
    %c0_5 = arith.constant 0 : index
    %6 = vector.load %arg3[%c0_4, %c0_5] : memref<32x1xf32, #tpu.memory_space<vmem>>, vector<32x1xf32>
    %7 = vector.broadcast %6 : vector<32x1xf32> to vector<32x256xf32>
    %8 = arith.mulf %5, %7 : vector<32x256xf32>
    %c0_6 = arith.constant 0 : index
    %c0_7 = arith.constant 0 : index
    %9 = vector.load %arg4[%c0_6, %c0_7] : memref<32x1xf32, #tpu.memory_space<vmem>>, vector<32x1xf32>
    %10 = vector.broadcast %9 : vector<32x1xf32> to vector<32x256xf32>
    %11 = arith.addf %8, %10 : vector<32x256xf32>
    %12 = arith.negf %11 : vector<32x256xf32>
    %13 = math.exp %12 : vector<32x256xf32>
    %cst_8 = arith.constant 1.000000e+00 : f32
    %14 = vector.broadcast %cst_8 : f32 to vector<32x256xf32>
    %15 = arith.addf %14, %13 : vector<32x256xf32>
    %16 = arith.divf %14, %15 : vector<32x256xf32>
    %17 = arith.mulf %11, %16 : vector<32x256xf32>
    %cst_9 = arith.constant 0.000000e+00 : f32
    %18 = vector.broadcast %cst_9 : f32 to vector<32x128xf32>
    %c0_10 = arith.constant 0 : index
    %c0_11 = arith.constant 0 : index
    %19 = vector.load %arg16[%c0_10, %c0_11] : memref<32x512xf32, #tpu.memory_space<vmem>>, vector<32x128xf32>
    tpu.vector_store %arg16[%c0_10, %c0_11], %18 {strides = array<i32>} : memref<32x512xf32, #tpu.memory_space<vmem>>, vector<32x128xf32>,
    %cst_12 = arith.constant 0.000000e+00 : f32
    %20 = vector.broadcast %cst_12 : f32 to vector<32x128xf32>
    %c0_13 = arith.constant 0 : index
    %c384 = arith.constant 384 : index
    %21 = vector.load %arg16[%c0_13, %c384] : memref<32x512xf32, #tpu.memory_space<vmem>>, vector<32x128xf32>
    tpu.vector_store %arg16[%c0_13, %c384], %20 {strides = array<i32>} : memref<32x512xf32, #tpu.memory_space<vmem>>, vector<32x128xf32>,
    %c0_14 = arith.constant 0 : index
    %c128 = arith.constant 128 : index
    %22 = vector.load %arg16[%c0_14, %c128] : memref<32x512xf32, #tpu.memory_space<vmem>>, vector<32x256xf32>
    tpu.vector_store %arg16[%c0_14, %c128], %17 {strides = array<i32>} : memref<32x512xf32, #tpu.memory_space<vmem>>, vector<32x256xf32>,
    %23 = tpu.iota {dimensions = array<i32: 1>} : vector<1x256xi32>
    %c16_i32 = arith.constant 16 : i32
    %c0_i32 = arith.constant 0 : i32
    %24 = arith.cmpi eq, %c16_i32, %c0_i32 : i32
    %c1_i32 = arith.constant 1 : i32
    %25 = arith.select %24, %c1_i32, %c16_i32 : i32
    %26 = vector.broadcast %25 : i32 to vector<1x256xi32>
    %27 = arith.remsi %23, %26 : vector<1x256xi32>
    %c0_i32_15 = arith.constant 0 : i32
    %28 = vector.broadcast %c0_i32_15 : i32 to vector<1x256xi32>
    %29 = arith.cmpi ne, %27, %28 : vector<1x256xi32>
    %c0_i32_16 = arith.constant 0 : i32
    %30 = vector.broadcast %c0_i32_16 : i32 to vector<1x256xi32>
    %31 = arith.cmpi slt, %27, %30 : vector<1x256xi32>
    %c0_i32_17 = arith.constant 0 : i32
    %32 = arith.cmpi slt, %25, %c0_i32_17 : i32
    %33 = vector.broadcast %32 : i1 to vector<1x256xi1>
    %34 = vector.broadcast %33 : vector<1x256xi1> to vector<1x256xi1>
    %35 = arith.xori %31, %34 : vector<1x256xi1>
    %36 = arith.andi %35, %29 : vector<1x256xi1>
    %37 = vector.broadcast %25 : i32 to vector<1x256xi32>
    %38 = arith.addi %27, %37 : vector<1x256xi32>
    %39 = arith.select %36, %38, %27 : vector<1x256xi1>, vector<1x256xi32>
    %c1_i32_18 = arith.constant 1 : i32
    %40 = vector.broadcast %c1_i32_18 : i32 to vector<1x256xi32>
    %41 = arith.cmpi sge, %39, %40 : vector<1x256xi32>
    %42 = arith.extui %41 : vector<1x256xi1> to vector<1x256xi32>
    %43 = arith.sitofp %42 : vector<1x256xi32> to vector<1x256xf32>
    %c14_i32 = arith.constant 14 : i32
    %44 = vector.broadcast %c14_i32 : i32 to vector<1x256xi32>
    %45 = arith.cmpi sle, %39, %44 : vector<1x256xi32>
    %46 = arith.extui %45 : vector<1x256xi1> to vector<1x256xi32>
    %47 = arith.sitofp %46 : vector<1x256xi32> to vector<1x256xf32>
    %cst_19 = arith.constant 0.000000e+00 : f32
    %48 = vector.broadcast %cst_19 : f32 to vector<32x256xf32>
    %c0_20 = arith.constant 0 : index
    %c111 = arith.constant 111 : index
    %49 = vector.load %arg16[%c0_20, %c111] : memref<32x512xf32, #tpu.memory_space<vmem>>, vector<32x256xf32>
    %50 = vector.broadcast %43 : vector<1x256xf32> to vector<32x256xf32>
    %51 = arith.mulf %49, %50 : vector<32x256xf32>
    %c0_21 = arith.constant 0 : index
    %c0_22 = arith.constant 0 : index
    %52 = vector.load %arg5[%c0_21, %c0_22] : memref<32x9xf32, #tpu.memory_space<vmem>>, vector<32x1xf32>
    %53 = vector.broadcast %52 : vector<32x1xf32> to vector<32x256xf32>
    %54 = arith.mulf %51, %53 : vector<32x256xf32>
    %55 = arith.addf %48, %54 : vector<32x256xf32>
    %c0_23 = arith.constant 0 : index
    %c112 = arith.constant 112 : index
    %56 = vector.load %arg16[%c0_23, %c112] : memref<32x512xf32, #tpu.memory_space<vmem>>, vector<32x256xf32>
    %c0_24 = arith.constant 0 : index
    %c1 = arith.constant 1 : index
    %57 = vector.load %arg5[%c0_24, %c1] : memref<32x9xf32, #tpu.memory_space<vmem>>, vector<32x1xf32>
    %58 = vector.broadcast %57 : vector<32x1xf32> to vector<32x256xf32>
    %59 = arith.mulf %56, %58 : vector<32x256xf32>
    %60 = arith.addf %55, %59 : vector<32x256xf32>
    %c0_25 = arith.constant 0 : index
    %c113 = arith.constant 113 : index
    %61 = vector.load %arg16[%c0_25, %c113] : memref<32x512xf32, #tpu.memory_space<vmem>>, vector<32x256xf32>
    %62 = vector.broadcast %47 : vector<1x256xf32> to vector<32x256xf32>
    %63 = arith.mulf %61, %62 : vector<32x256xf32>
    %c0_26 = arith.constant 0 : index
    %c2 = arith.constant 2 : index
    %64 = vector.load %arg5[%c0_26, %c2] : memref<32x9xf32, #tpu.memory_space<vmem>>, vector<32x1xf32>
    %65 = vector.broadcast %64 : vector<32x1xf32> to vector<32x256xf32>
    %66 = arith.mulf %63, %65 : vector<32x256xf32>
    %67 = arith.addf %60, %66 : vector<32x256xf32>
    %c0_27 = arith.constant 0 : index
    %c127 = arith.constant 127 : index
    %68 = vector.load %arg16[%c0_27, %c127] : memref<32x512xf32, #tpu.memory_space<vmem>>, vector<32x256xf32>
    %69 = vector.broadcast %43 : vector<1x256xf32> to vector<32x256xf32>
    %70 = arith.mulf %68, %69 : vector<32x256xf32>
    %c0_28 = arith.constant 0 : index
    %c3 = arith.constant 3 : index
    %71 = vector.load %arg5[%c0_28, %c3] : memref<32x9xf32, #tpu.memory_space<vmem>>, vector<32x1xf32>
    %72 = vector.broadcast %71 : vector<32x1xf32> to vector<32x256xf32>
    %73 = arith.mulf %70, %72 : vector<32x256xf32>
    %74 = arith.addf %67, %73 : vector<32x256xf32>
    %c0_29 = arith.constant 0 : index
    %c128_30 = arith.constant 128 : index
    %75 = vector.load %arg16[%c0_29, %c128_30] : memref<32x512xf32, #tpu.memory_space<vmem>>, vector<32x256xf32>
    %c0_31 = arith.constant 0 : index
    %c4 = arith.constant 4 : index
    %76 = vector.load %arg5[%c0_31, %c4] : memref<32x9xf32, #tpu.memory_space<vmem>>, vector<32x1xf32>
    %77 = vector.broadcast %76 : vector<32x1xf32> to vector<32x256xf32>
    %78 = arith.mulf %75, %77 : vector<32x256xf32>
    %79 = arith.addf %74, %78 : vector<32x256xf32>
    %c0_32 = arith.constant 0 : index
    %c129 = arith.constant 129 : index
    %80 = vector.load %arg16[%c0_32, %c129] : memref<32x512xf32, #tpu.memory_space<vmem>>, vector<32x256xf32>
    %81 = vector.broadcast %47 : vector<1x256xf32> to vector<32x256xf32>
    %82 = arith.mulf %80, %81 : vector<32x256xf32>
    %c0_33 = arith.constant 0 : index
    %c5 = arith.constant 5 : index
    %83 = vector.load %arg5[%c0_33, %c5] : memref<32x9xf32, #tpu.memory_space<vmem>>, vector<32x1xf32>
    %84 = vector.broadcast %83 : vector<32x1xf32> to vector<32x256xf32>
    %85 = arith.mulf %82, %84 : vector<32x256xf32>
    %86 = arith.addf %79, %85 : vector<32x256xf32>
    %c0_34 = arith.constant 0 : index
    %c143 = arith.constant 143 : index
    %87 = vector.load %arg16[%c0_34, %c143] : memref<32x512xf32, #tpu.memory_space<vmem>>, vector<32x256xf32>
    %88 = vector.broadcast %43 : vector<1x256xf32> to vector<32x256xf32>
    %89 = arith.mulf %87, %88 : vector<32x256xf32>
    %c0_35 = arith.constant 0 : index
    %c6 = arith.constant 6 : index
    %90 = vector.load %arg5[%c0_35, %c6] : memref<32x9xf32, #tpu.memory_space<vmem>>, vector<32x1xf32>
    %91 = vector.broadcast %90 : vector<32x1xf32> to vector<32x256xf32>
    %92 = arith.mulf %89, %91 : vector<32x256xf32>
    %93 = arith.addf %86, %92 : vector<32x256xf32>
    %c0_36 = arith.constant 0 : index
    %c144 = arith.constant 144 : index
    %94 = vector.load %arg16[%c0_36, %c144] : memref<32x512xf32, #tpu.memory_space<vmem>>, vector<32x256xf32>
    %c0_37 = arith.constant 0 : index
    %c7 = arith.constant 7 : index
    %95 = vector.load %arg5[%c0_37, %c7] : memref<32x9xf32, #tpu.memory_space<vmem>>, vector<32x1xf32>
    %96 = vector.broadcast %95 : vector<32x1xf32> to vector<32x256xf32>
    %97 = arith.mulf %94, %96 : vector<32x256xf32>
    %98 = arith.addf %93, %97 : vector<32x256xf32>
    %c0_38 = arith.constant 0 : index
    %c145 = arith.constant 145 : index
    %99 = vector.load %arg16[%c0_38, %c145] : memref<32x512xf32, #tpu.memory_space<vmem>>, vector<32x256xf32>
    %100 = vector.broadcast %47 : vector<1x256xf32> to vector<32x256xf32>
    %101 = arith.mulf %99, %100 : vector<32x256xf32>
    %c0_39 = arith.constant 0 : index
    %c8 = arith.constant 8 : index
    %102 = vector.load %arg5[%c0_39, %c8] : memref<32x9xf32, #tpu.memory_space<vmem>>, vector<32x1xf32>
    %103 = vector.broadcast %102 : vector<32x1xf32> to vector<32x256xf32>
    %104 = arith.mulf %101, %103 : vector<32x256xf32>
    %105 = arith.addf %98, %104 : vector<32x256xf32>
    %c0_40 = arith.constant 0 : index
    %c0_41 = arith.constant 0 : index
    %106 = vector.load %arg6[%c0_40, %c0_41] : memref<32x1xf32, #tpu.memory_space<vmem>>, vector<32x1xf32>
    %107 = vector.broadcast %106 : vector<32x1xf32> to vector<32x256xf32>
    %108 = arith.mulf %105, %107 : vector<32x256xf32>
    %c0_42 = arith.constant 0 : index
    %c0_43 = arith.constant 0 : index
    %109 = vector.load %arg7[%c0_42, %c0_43] : memref<32x1xf32, #tpu.memory_space<vmem>>, vector<32x1xf32>
    %110 = vector.broadcast %109 : vector<32x1xf32> to vector<32x256xf32>
    %111 = arith.addf %108, %110 : vector<32x256xf32>
    %112 = arith.negf %111 : vector<32x256xf32>
    %113 = math.exp %112 : vector<32x256xf32>
    %cst_44 = arith.constant 1.000000e+00 : f32
    %114 = vector.broadcast %cst_44 : f32 to vector<32x256xf32>
    %115 = arith.addf %114, %113 : vector<32x256xf32>
    %116 = arith.divf %114, %115 : vector<32x256xf32>
    %117 = arith.mulf %111, %116 : vector<32x256xf32>
    %cst_45 = arith.constant dense<0.000000e+00> : vector<32xf32>
    %118 = vector.multi_reduction <add>, %117, %cst_45 [1] : vector<32x256xf32> to vector<32xf32>
    %119 = vector.shape_cast %118 : vector<32xf32> to vector<32x1xf32>
    %cst_46 = arith.constant 3.906250e-03 : f32
    %120 = vector.broadcast %cst_46 : f32 to vector<32x1xf32>
    %121 = arith.mulf %119, %120 : vector<32x1xf32>
    %c0_47 = arith.constant 0 : index
    %c0_48 = arith.constant 0 : index
    %122 = vector.load %arg8[%c0_47, %c0_48] : memref<2x32xf32, #tpu.memory_space<vmem>>, vector<2x32xf32>
    %cst_49 = arith.constant dense<0.000000e+00> : vector<2x1xf32>
    %123 = tpu.matmul %122, %121, %cst_49 {dimension_numbers = #tpu.dot_dimension_numbers<[1], [0], [0], [1], [0, 0, 1, 1], [], []>} : vector<2x32xf32>, vector<32x1xf32>, vector<2x1xf32> -> vector<2x1xf32>
    %c0_50 = arith.constant 0 : index
    %c0_51 = arith.constant 0 : index
    %124 = vector.load %arg9[%c0_50, %c0_51] : memref<2x1xf32, #tpu.memory_space<vmem>>, vector<2x1xf32>
    %125 = arith.addf %123, %124 : vector<2x1xf32>
    %126 = arith.negf %125 : vector<2x1xf32>
    %127 = math.exp %126 : vector<2x1xf32>
    %cst_52 = arith.constant 1.000000e+00 : f32
    %128 = vector.broadcast %cst_52 : f32 to vector<2x1xf32>
    %129 = arith.addf %128, %127 : vector<2x1xf32>
    %130 = arith.divf %128, %129 : vector<2x1xf32>
    %131 = arith.mulf %125, %130 : vector<2x1xf32>
    %c0_53 = arith.constant 0 : index
    %c0_54 = arith.constant 0 : index
    %132 = vector.load %arg10[%c0_53, %c0_54] : memref<32x2xf32, #tpu.memory_space<vmem>>, vector<32x2xf32>
    %cst_55 = arith.constant dense<0.000000e+00> : vector<32x1xf32>
    %133 = tpu.matmul %132, %131, %cst_55 {dimension_numbers = #tpu.dot_dimension_numbers<[1], [0], [0], [1], [0, 0, 1, 1], [], []>} : vector<32x2xf32>, vector<2x1xf32>, vector<32x1xf32> -> vector<32x1xf32>
    %c0_56 = arith.constant 0 : index
    %c0_57 = arith.constant 0 : index
    %134 = vector.load %arg11[%c0_56, %c0_57] : memref<32x1xf32, #tpu.memory_space<vmem>>, vector<32x1xf32>
    %135 = arith.addf %133, %134 : vector<32x1xf32>
    %136 = arith.negf %135 : vector<32x1xf32>
    %137 = math.exp %136 : vector<32x1xf32>
    %cst_58 = arith.constant 1.000000e+00 : f32
    %138 = vector.broadcast %cst_58 : f32 to vector<32x1xf32>
    %139 = arith.addf %138, %137 : vector<32x1xf32>
    %140 = arith.divf %138, %139 : vector<32x1xf32>
    %141 = vector.broadcast %140 : vector<32x1xf32> to vector<32x256xf32>
    %142 = arith.mulf %117, %141 : vector<32x256xf32>
    %c0_59 = arith.constant 0 : index
    %c0_60 = arith.constant 0 : index
    %143 = vector.load %arg12[%c0_59, %c0_60] : memref<8x32xf32, #tpu.memory_space<vmem>>, vector<8x32xf32>
    %144 = arith.truncf %143 : vector<8x32xf32> to vector<8x32xbf16>
    %145 = arith.truncf %142 : vector<32x256xf32> to vector<32x256xbf16>
    %cst_61 = arith.constant dense<0.000000e+00> : vector<8x256xf32>
    %146 = tpu.matmul %144, %145, %cst_61 {dimension_numbers = #tpu.dot_dimension_numbers<[1], [0], [0], [1], [0, 0, 1, 1], [], []>} : vector<8x32xbf16>, vector<32x256xbf16>, vector<8x256xf32> -> vector<8x256xf32>
    %c0_62 = arith.constant 0 : index
    %c0_63 = arith.constant 0 : index
    %147 = vector.load %arg13[%c0_62, %c0_63] : memref<8x1xf32, #tpu.memory_space<vmem>>, vector<8x1xf32>
    %148 = vector.broadcast %147 : vector<8x1xf32> to vector<8x256xf32>
    %149 = arith.mulf %146, %148 : vector<8x256xf32>
    %c0_64 = arith.constant 0 : index
    %c0_65 = arith.constant 0 : index
    %150 = vector.load %arg14[%c0_64, %c0_65] : memref<8x1xf32, #tpu.memory_space<vmem>>, vector<8x1xf32>
    %151 = vector.broadcast %150 : vector<8x1xf32> to vector<8x256xf32>
    %152 = arith.addf %149, %151 : vector<8x256xf32>
    %153 = arith.addf %152, %1 : vector<8x256xf32>
    %c0_66 = arith.constant 0 : index
    %c0_67 = arith.constant 0 : index
    %c0_68 = arith.constant 0 : index
    %154 = vector.load %arg15[%c0_66, %c0_67, %c0_68] : memref<1x8x256xf32, #tpu.memory_space<vmem>>, vector<1x8x256xf32>
    %155 = vector.shape_cast %154 : vector<1x8x256xf32> to vector<8x256xf32>
    %156 = vector.shape_cast %153 : vector<8x256xf32> to vector<1x8x256xf32>
    tpu.vector_store %arg15[%c0_66, %c0_67, %c0_68], %156 {strides = array<i32>} : memref<1x8x256xf32, #tpu.memory_space<vmem>>, vector<1x8x256xf32>,
    return
  }
  func.func @transform_0(%arg0: i32) -> (i32, i32, i32) {
    %c0_i32 = arith.constant 0 : i32
    %c0_i32_0 = arith.constant 0 : i32
    %c0_i32_1 = arith.constant 0 : i32
    return %arg0, %c0_i32, %c0_i32_0 : i32, i32, i32
  }
  func.func @transform_1(%arg0: i32) -> (i32, i32) {
    %c0_i32 = arith.constant 0 : i32
    %c0_i32_0 = arith.constant 0 : i32
    %c0_i32_1 = arith.constant 0 : i32
    return %c0_i32, %c0_i32_0 : i32, i32
  }
  func.func @transform_2(%arg0: i32) -> (i32, i32) {
    %c0_i32 = arith.constant 0 : i32
    %c0_i32_0 = arith.constant 0 : i32
    %c0_i32_1 = arith.constant 0 : i32
    return %c0_i32, %c0_i32_0 : i32, i32
  }
  func.func @transform_3(%arg0: i32) -> (i32, i32) {
    %c0_i32 = arith.constant 0 : i32
    %c0_i32_0 = arith.constant 0 : i32
    %c0_i32_1 = arith.constant 0 : i32
    return %c0_i32, %c0_i32_0 : i32, i32
  }
  func.func @transform_4(%arg0: i32) -> (i32, i32) {
    %c0_i32 = arith.constant 0 : i32
    %c0_i32_0 = arith.constant 0 : i32
    %c0_i32_1 = arith.constant 0 : i32
    return %c0_i32, %c0_i32_0 : i32, i32
  }
  func.func @transform_5(%arg0: i32) -> (i32, i32) {
    %c0_i32 = arith.constant 0 : i32
    %c0_i32_0 = arith.constant 0 : i32
    %c0_i32_1 = arith.constant 0 : i32
    return %c0_i32, %c0_i32_0 : i32, i32
  }
  func.func @transform_6(%arg0: i32) -> (i32, i32) {
    %c0_i32 = arith.constant 0 : i32
    %c0_i32_0 = arith.constant 0 : i32
    %c0_i32_1 = arith.constant 0 : i32
    return %c0_i32, %c0_i32_0 : i32, i32
  }
  func.func @transform_7(%arg0: i32) -> (i32, i32) {
    %c0_i32 = arith.constant 0 : i32
    %c0_i32_0 = arith.constant 0 : i32
    %c0_i32_1 = arith.constant 0 : i32
    return %c0_i32, %c0_i32_0 : i32, i32
  }
  func.func @transform_8(%arg0: i32) -> (i32, i32) {
    %c0_i32 = arith.constant 0 : i32
    %c0_i32_0 = arith.constant 0 : i32
    %c0_i32_1 = arith.constant 0 : i32
    return %c0_i32, %c0_i32_0 : i32, i32
  }
  func.func @transform_9(%arg0: i32) -> (i32, i32) {
    %c0_i32 = arith.constant 0 : i32
    %c0_i32_0 = arith.constant 0 : i32
    %c0_i32_1 = arith.constant 0 : i32
    return %c0_i32, %c0_i32_0 : i32, i32
  }
  func.func @transform_10(%arg0: i32) -> (i32, i32) {
    %c0_i32 = arith.constant 0 : i32
    %c0_i32_0 = arith.constant 0 : i32
    %c0_i32_1 = arith.constant 0 : i32
    return %c0_i32, %c0_i32_0 : i32, i32
  }
  func.func @transform_11(%arg0: i32) -> (i32, i32) {
    %c0_i32 = arith.constant 0 : i32
    %c0_i32_0 = arith.constant 0 : i32
    %c0_i32_1 = arith.constant 0 : i32
    return %c0_i32, %c0_i32_0 : i32, i32
  }
  func.func @transform_12(%arg0: i32) -> (i32, i32) {
    %c0_i32 = arith.constant 0 : i32
    %c0_i32_0 = arith.constant 0 : i32
    %c0_i32_1 = arith.constant 0 : i32
    return %c0_i32, %c0_i32_0 : i32, i32
  }
  func.func @transform_13(%arg0: i32) -> (i32, i32) {
    %c0_i32 = arith.constant 0 : i32
    %c0_i32_0 = arith.constant 0 : i32
    %c0_i32_1 = arith.constant 0 : i32
    return %c0_i32, %c0_i32_0 : i32, i32
  }
  func.func @transform_14(%arg0: i32) -> (i32, i32, i32) {
    %c0_i32 = arith.constant 0 : i32
    %c0_i32_0 = arith.constant 0 : i32
    %c0_i32_1 = arith.constant 0 : i32
    return %arg0, %c0_i32, %c0_i32_0 : i32, i32, i32
  }
}

</mosaic_0001>

<bundles_post_ra>
// kernel: mbconv_forward.1
= control target key start
LH: loop header
LB: loop body
LE: loop exit
PB: predicated region body
PF: predicated region fallthrough
CT: control target
= control target key end

     0   :  { %s2691_s29 = smov 0   ;;  %s3884_s0 = inlined_call_operand.vmem [shape: f32[2,8,256], index: 0, kind: input, shape index: {}]   ;;  %s3885_s1 = inlined_call_operand.vmem [shape: f32[32,8], index: 1, kind: input, shape index: {}]   ;;  %s3886_s2 = inlined_call_operand.vmem [shape: f32[32,1], index: 2, kind: input, shape index: {}]   ;;  %s3887_s3 = inlined_call_operand.vmem [shape: f32[32,1], index: 3, kind: input, shape index: {}]   ;;  %s3888_s4 = inlined_call_operand.vmem [shape: f32[32,9], index: 4, kind: input, shape index: {}]   ;;  %s3889_s5 = inlined_call_operand.vmem [shape: f32[32,1], index: 5, kind: input, shape index: {}]   ;;  %s3890_s6 = inlined_call_operand.vmem [shape: f32[32,1], index: 6, kind: input, shape index: {}]   ;;  %s3891_s7 = inlined_call_operand.vmem [shape: f32[2,32], index: 7, kind: input, shape index: {}]   ;;  %s3892_s8 = inlined_call_operand.vmem [shape: f32[2,1], index: 8, kind: input, shape index: {}]   ;;  %s3893_s9 = inlined_call_operand.vmem [shape: f32[32,2], index: 9, kind: input, shape index: {}]   ;;  %s3894_s10 = inlined_call_operand.vmem [shape: f32[32,1], index: 10, kind: input, shape index: {}]   ;;  %s3895_s11 = inlined_call_operand.vmem [shape: f32[8,32], index: 11, kind: input, shape index: {}]   ;;  %s3896_s12 = inlined_call_operand.vmem [shape: f32[8,1], index: 12, kind: input, shape index: {}]   ;;  %s3897_s13 = inlined_call_operand.vmem [shape: f32[8,1], index: 13, kind: input, shape index: {}]   ;;  %s3898_s14 = inlined_call_operand.vmem [shape: f32[2,8,256], index: 14, kind: output, shape index: {}]  }
   0x1 LB: > { %s2304_s30 = sadd.s32 4294967295, %s2590_s29   ;;  %p2308_p0 = scmp.ge.s32.totalorder %s2590_s29, 1  ;;  %s2590_s29 = sphi %s2691_s29, %s24_s29  }
   0x2   : > { %p412_p1 = scmp.lt.s32.totalorder %s2590_s29, 3 }
   0x4   : > { %p413_p2 = pnand %p2308_p0, %p412_p1 }
   0x6   : > { %416 = sbr.rel (%p413_p2) target bundleno = 1827 (0x723), region = 76 }
   0xd   : > { %v578_v0 = vld [vmem:[%s3887_s3] sm:$0xff]  ;;  %p458_p3 = scmp.lt.s32.totalorder %s2304_s30, 1  ;;  %v682_v1 = vlaneseq  ;;  %v2592_v2 = vmov 0   ;;  %v2593_v3 = vmov 1   ;;  %v579_v5 = vld [vmem:[%s3887_s3 + $0x8] sm:$0xff]  ;;  %vm486_vm0 = vcmask 1043456  }
   0xe   : > { %2425 = vset.pattern.permute.xlu1 %v2592_v2  ;;  %2426 = vset.pattern.permute.xlu0 %v2593_v3  ;;  %v2707_v4 = vld [vmem:[%s3888_s4] sm:$0xff]  ;;  %v2721_v7 = vld [vmem:[%s3888_s4 + $0x8] sm:$0xff]  ;;  %v2594_v14 = vmov 2   ;;  %v549_v16 = vld [vmem:[%s3886_s2 + $0x18] sm:$0xff]  ;;  %vm479_vm5 = vcmask 64512   ;;  %v3899_v28 = vmov 0.0  }
   0xf   : > { %584 = vperm.xlu1 %2425, %v578_v0   ;;  %s3909_s30 = smov (!%p458_p3, %s2304_s30), 1  ;;  %805 = vperm.xlu0 %2426, %v2707_v4   ;;  %v683_v6 = vand.u32 127, %v682_v1  ;;  %v471_v8 = vld [vmem:[%s3885_s1] sm:$0xff]  ;;  %v472_v13 = vld [vmem:[%s3885_s1 + $0x8] sm:$0xff]  ;;  %v473_v18 = vld [vmem:[%s3885_s1 + $0x10] sm:$0xff]  ;;  %v2596_v35 = vmov 3  }
  0x10   : > { %525 = vmatprep.mubr.bf16.mxu0 %v2592_v2  ;;  %535 = vmatprep.mubr.bf16.mxu1 %v2592_v2  ;;  %s2354_s21 = sshll.u32 %s3909_s30, 4  ;;  %v474_v19 = vld [vmem:[%s3885_s1 + $0x18] sm:$0xff]  ;;  %v2751_v21 = vld [vmem:[%s3888_s4 + $0x10] sm:$0xff]  ;;  %v475_v25 = vpack.c.bf16 %v472_v13, %v471_v8  ;;  %v2597_v37 = vmov 4   ;;  %v2598_v38 = vmov 5   ;;  %v2599_v39 = vmov 6  }
  0x11   : > { %s2728_s26 = scalar_lea.vmem %s3884_s0, %s2354_s21  ;;  %v684_v9 = vadd.s32 128, %v683_v6  ;;  %v689_v10 = vand.u32 15, %v683_v6  ;;  %v476_v26 = vpack.c.bf16 %v474_v19, %v473_v18  ;;  %v581_v27 = vld [vmem:[%s3887_s3 + $0x18] sm:$0xff]  ;;  %s2600_s17 = smov 113   ;;  %v2602_v40 = vmov 7   ;;  %v546_v42 = vld [vmem:[%s3886_s2] sm:$0xff] }
  0x12   : > { %v470_v11 = vld [vmem:[%s2728_s26 + $0x8] sm:$0xff]  ;;  %v469_v12 = vld [vmem:[%s2728_s26] sm:$0xff]  ;;  %v2785_v36 = vld [vmem:[%s3888_s4 + $0x18] sm:$0xff]  ;;  %s2601_s18 = smov 15   ;;  %s2603_s19 = smov 127   ;;  %v2604_v41 = vmov 8  }
  0x13   : > { %589 = vperm.xlu1 %2425, %v579_v5   ;;  %2429 = vset.pattern.permute.xlu0 %v2594_v14  ;;  %v478_v15 = vpack.c.bf16 %v470_v11, %v470_v11  ;;  %v477_v17 = vpack.c.bf16 %v469_v12, %v469_v12  ;;  %v696_v20 = vand.u32 15, %v684_v9  ;;  %vm2753_vm1 = vcmp.le.s32.totalorder %v689_v10, 14  ;;  %v547_v43 = vld [vmem:[%s3886_s2 + $0x8] sm:$0xff]  ;;  %v548_v44 = vld [vmem:[%s3886_s2 + $0x10] sm:$0xff]  ;;  %s2605_s16 = smov 1   ;;  %s2608_s20 = smov 126  }
  0x14   : > { %929 = vperm.xlu0 %2429, %v2721_v7   ;;  %vm2757_vm2 = vcmp.ge.s32.totalorder %v689_v10, 1  ;;  %v2326_v29 = vsel %vm2753_vm1, 1.0, %v3899_v28  ;;  %v580_v45 = vld [vmem:[%s3887_s3 + $0x10] sm:$0xff]  ;;  %s2609_s22 = smov 112   ;;  %s2610_s23 = smov 110   ;;  %vm1348_vm6 = vcmask 121856  }
  0x15   : > { %2313 = vmatprep.subr.msk.bf16.mxu0 %vm486_vm0, %v478_v15  ;;  %2391 = vmatprep.subr.msk.bf16.mxu1 %vm486_vm0, %v478_v15  ;;  %v488_v24 = vsel %vm486_vm0, %v477_v17, 0  ;;  %vm716_vm3 = vcmp.le.s32.totalorder %v696_v20, 14  ;;  %vm710_vm4 = vcmp.ge.s32.totalorder %v696_v20, 1  ;;  %v2324_v31 = vsel %vm2757_vm2, 1.0, %v3899_v28  ;;  %s2611_s24 = smov 96  }
  0x16   : > { %494 = vmatpush1.bf16.msra.mxu0 %v488_v24  ;;  %2392 = vmatpush1.bf16.msra.mxu1 %v488_v24  ;;  %v2327_v30 = vsel %vm716_vm3, 1.0, %v3899_v28  ;;  %v2325_v32 = vsel %vm710_vm4, 1.0, %v3899_v28  ;;  %vm907_vm7 = vcmask 924672   ;;  %vm868_vm8 = vcmask 1039360  }
  0x17   : > { %567 = vperm.xlu1 %2425, %v549_v16   ;;  %v2776_v33 = vpack.i.bf16 %v2327_v30, %v2326_v29  ;;  %v2778_v34 = vpack.i.bf16 %v2325_v32, %v2324_v31  ;;  %vm1230_vm9 = vcmask 7168   ;;  %vm1563_vm10 = vcmask 138240  }
  0x18   : > { %933 = vperm.xlu0 %2429, %v2751_v21   ;;  %vm739_vm11 = vcmask 908288   ;;  %vm988_vm12 = vcmask 1031168   ;;  %vm1105_vm13 = vcmask 916480   ;;  %vm1311_vm14 = vcmask 900096  }
  0x19   : > { %2314 = vmatmul.mubr.msk.bf16.vlgmr.msra.gmra.mrb[0].mxu0 %vm479_vm5, %v475_v25  ;;  %2315 = vmatmul.mubr.msk.bf16.vlgmr.msra.gmra.mrb[0].mxu1 %vm479_vm5, %v476_v26  ;;  %vm1429_vm15 = vcmask 785408   ;;  %vm1526_vm0 = vcmask 777216   ;;  %vm1644_vm1 = vcmask 769024   ;;  %vm2615_vm2 = vmmov 0  }
  0x1a   : > { %2220 = vmatprep.mubr.bf16.mxu0 %v2592_v2  ;;  %vm1903_vm3 = vcmask 261120   ;;  %vm1992_vm4 = vcmask 15360   ;;  %vm2005_vm5 = vcmask 1041408  }
  0x1b   : > { %599 = vperm.xlu1 %2425, %v581_v27  }
  0x1c   : > { %2437 = vset.pattern.permute.xlu0 %v2596_v35 }
  0x1d   : > { %1042 = vperm.xlu0 %2437, %v2707_v4  }
  0x1f   : > { %2427 = vset.pattern.permute.xlu1 %v2593_v3 }
  0x20   : > { %809 = vperm.xlu1 %2427, %v2721_v7  }
  0x21   : > { %1054 = vperm.xlu0 %2437, %v2785_v36  }
  0x24   : > { %2428 = vset.pattern.permute.xlu1 %v2594_v14 }
  0x25   : > { %925 = vperm.xlu1 %2428, %v2707_v4   ;;  %2446 = vset.pattern.permute.xlu0 %v2597_v37 }
  0x26   : > { %1143 = vperm.xlu0 %2446, %v2721_v7  }
  0x29   : > { %2430 = vset.pattern.permute.xlu1 %v2593_v3 }
  0x2a   : > { %813 = vperm.xlu1 %2430, %v2751_v21   ;;  %1147 = vperm.xlu0 %2446, %v2751_v21  }
  0x2e   : > { %817 = vperm.xlu1 %2430, %v2785_v36   ;;  %2456 = vset.pattern.permute.xlu0 %v2598_v38 }
  0x2f   : > { %1260 = vperm.xlu0 %2456, %v2785_v36  }
  0x32   : > { %2431 = vset.pattern.permute.xlu1 %v2596_v35 }
  0x33   : > { %1046 = vperm.xlu1 %2431, %v2721_v7   ;;  %2457 = vset.pattern.permute.xlu0 %v2599_v39 }
  0x34   : > { %1370 = vperm.xlu0 %2457, %v2721_v7  }
  0x37   : > { %2433 = vrot.lane.b32.xlu1 %v2776_v33, %s2600_s17  ;;  %s2606_s17 = smov 17  }
  0x38   : > { %2438 = vset.pattern.permute.xlu1 %v2594_v14  ;;  %2460 = vrot.lane.b32.xlu0 %v2778_v34, %s2601_s18  ;;  %s2607_s18 = smov 111  }
  0x3b   : > { %937 = vperm.xlu1 %2438, %v2785_v36  }
  0x3c   : > { %1378 = vperm.xlu0 %2457, %v2785_v36  }
  0x3f   : > { %2439 = vset.pattern.permute.xlu1 %v2597_v37 }
  0x40   : > { %1139 = vperm.xlu1 %2439, %v2707_v4   ;;  %2466 = vset.pattern.permute.xlu0 %v2602_v40 }
  0x41   : > { %1471 = vperm.xlu0 %2466, %v2751_v21  }
  0x44   : > { %2441 = vrot.lane.b32.xlu1 %v2778_v34, %s2603_s19 }
  0x45   : > { %2445 = vset.pattern.permute.xlu1 %v2596_v35  ;;  %2473 = vset.pattern.permute.xlu0 %v2604_v41 }
  0x46   : > { %1589 = vperm.xlu0 %2473, %v2751_v21  }
  0x48   : > { %1050 = vperm.xlu1 %2445, %v2751_v21  }
  0x4a   : > { %2474 = vset.pattern.permute.xlu0 %v2592_v2 }
  0x4b   : > { %552 = vperm.xlu0 %2474, %v546_v42  }
  0x4c   : > { %2447 = vset.pattern.permute.xlu1 %v2598_v38 }
  0x4d   : > { %1248 = vperm.xlu1 %2447, %v2707_v4  }
  0x4f   : > { %557 = vperm.xlu0 %2474, %v547_v43  }
  0x51   : > { %1252 = vperm.xlu1 %2447, %v2721_v7  }
  0x53   : > { %562 = vperm.xlu0 %2474, %v548_v44   ;;  %v1678_v44 = vld [vmem:[%s3889_s5 + $0x8] sm:$0xff] }
  0x55   : > { %2448 = vset.pattern.permute.xlu1 %v2597_v37 }
  0x56   : > { %1151 = vperm.xlu1 %2448, %v2785_v36  }
  0x57   : > { %594 = vperm.xlu0 %2474, %v580_v45   ;;  %v1677_v45 = vld [vmem:[%s3889_s5] sm:$0xff] }
  0x5a   : > { %2449 = vset.pattern.permute.xlu1 %v2599_v39 }
  0x5b   : > { %1366 = vperm.xlu1 %2449, %v2707_v4   ;;  %767 = vperm.xlu0 %2474, %v2721_v7  }
  0x5f   : > { %2451 = vrot.lane.b32.xlu1 %v2776_v33, %s2605_s16  ;;  %777 = vperm.xlu0 %2474, %v2785_v36   ;;  %s2612_s16 = smov 95  }
  0x60   : > { %2455 = vset.pattern.permute.xlu1 %v2598_v38 }
  0x63   : > { %1256 = vperm.xlu1 %2455, %v2751_v21  }
  0x67   : > { %2458 = vset.pattern.permute.xlu1 %v2602_v40 }
  0x68   : > { %1463 = vperm.xlu1 %2458, %v2707_v4  }
  0x6c   : > { %1467 = vperm.xlu1 %2458, %v2721_v7  }
  0x70   : > { %2464 = vset.pattern.permute.xlu1 %v2599_v39 }
  0x71   : > { %1374 = vperm.xlu1 %2464, %v2751_v21  }
  0x75   : > { %2465 = vset.pattern.permute.xlu1 %v2604_v41 }
  0x76   : > { %1581 = vperm.xlu1 %2465, %v2707_v4  }
  0x7a   : > { %1585 = vperm.xlu1 %2465, %v2721_v7  }
  0x7e   : > { %2467 = vset.pattern.permute.xlu1 %v2602_v40 }
  0x7f   : > { %1475 = vperm.xlu1 %2467, %v2785_v36  }
  0x83   : > { %2469 = vrot.lane.b32.xlu1 %v2776_v33, %s2606_s17 }
  0x84   : > { %2475 = vset.pattern.permute.xlu1 %v2604_v41 }
  0x87   : > { %1593 = vperm.xlu1 %2475, %v2785_v36  }
  0x8b   : > { %2476 = vset.pattern.permute.xlu1 %v2592_v2 }
  0x8c   : > { %762 = vperm.xlu1 %2476, %v2707_v4  }
  0x8e   : > { %v2841_v46 = vpop.permute.xlu1 %584  ;;  %v2843_v47 = vpop.permute.xlu0 %805 }
  0x8f   : > { %v820_v50 = vmul.f32 0.0, %v2843_v47 }
  0x90   : > { %2478 = vrot.lane.b32.xlu1 %v2778_v34, %s2607_s18 }
  0x92   : > { %v2847_v48 = vpop.permute.xlu1 %589 }
  0x93   : > { %v2849_v49 = vpop.permute.xlu0 %929 }
  0x94   : > { %772 = vperm.xlu1 %2476, %v2751_v21  }
  0x96   : > { %v2853_v51 = vpop.permute.xlu1 %567 }
  0x97   : > { %v2856_v52 = vpop.permute.xlu0 %933 }
  0x98   : > { %844 = vrot.lane.b32.xlu1 %v820_v50, %s2603_s19 }
  0x9a   : > { %v2858_v53 = vpop.permute.xlu1 %599 }
  0x9c   : > { %v2862_v55 = vpop.permute.xlu0 %1042 }
  0x9f   : > { %v2860_v54 = vpop.permute.xlu1 %809 }
  0xa0   : > { %v823_v56 = vmul.f32 0.0, %v2860_v54  ;;  %v2868_v58 = vpop.permute.xlu0 %1054 }
  0xa2   : > { %850 = vrot.lane.b32.xlu0 %v823_v56, %s2603_s19 }
  0xa4   : > { %v2866_v57 = vpop.permute.xlu1 %925 }
  0xa5   : > { %v2872_v60 = vpop.permute.xlu0 %1143 }
  0xa9   : > { %v2870_v59 = vpop.permute.xlu1 %813  ;;  %v2876_v62 = vpop.permute.xlu0 %1147 }
  0xaa   : > { %v826_v9 = vmul.f32 0.0, %v2870_v59 }
  0xad   : > { %v2874_v61 = vpop.permute.xlu1 %817 }
  0xae   : > { %v2883_v2 = vpop.permute.xlu0 %1260  ;;  %v829_v8 = vmul.f32 0.0, %v2874_v61 }
  0xb2   : > { %v2878_v63 = vpop.permute.xlu1 %1046 }
  0xb3   : > { %v2893_v7 = vpop.permute.xlu0 %1370 }
  0xb6   : > { %v2880_v0 = vpop.permute.xlu1 %2433 }
  0xb7   : > { %v2435_v1 = vunpack.i.l.bf16 %v2880_v0  ;;  %v2901_v11 = vpop.permute.xlu0 %2460 }
  0xb8   : > { %v2463_v32 = vunpack.i.h.bf16 %v2901_v11 }
  0xb9   : > { %v912_v3 = vmul.f32 0.0, %v2435_v1 }
  0xba   : > { %v2887_v4 = vpop.permute.xlu1 %937  ;;  %v2944_v36 = vmul.f32 0.0, %v2463_v32 }
  0xbb   : > { %v943_v5 = vmul.f32 %v2849_v49, %v912_v3  ;;  %v940_v6 = vmul.f32 %v2866_v57, %v912_v3  ;;  %v2912_v18 = vpop.permute.xlu0 %1378  ;;  %v949_v20 = vmul.f32 %v2887_v4, %v912_v3  ;;  %v946_v21 = vmul.f32 %v2856_v52, %v912_v3 }
  0xbc   : > { %v1386_v41 = vmul.f32 %v2893_v7, %v2944_v36 }
  0xbd   : > { %970 = vrot.lane.b32.xlu0 %v943_v5, %s2608_s20  ;;  %964 = vrot.lane.b32.xlu1 %v940_v6, %s2608_s20 }
  0xbf   : > { %v2897_v10 = vpop.permute.xlu1 %1139 }
  0xc0   : > { %v2923_v23 = vpop.permute.xlu0 %1471 }
  0xc1   : > { %862 = vrot.lane.b32.xlu0 %v829_v8, %s2603_s19  ;;  %856 = vrot.lane.b32.xlu1 %v826_v9, %s2603_s19 }
  0xc3   : > { %v2903_v12 = vpop.permute.xlu1 %2441 }
  0xc4   : > { %v2443_v13 = vunpack.i.l.bf16 %v2903_v12 }
  0xc5   : > { %v2930_v26 = vpop.permute.xlu0 %1589 }
  0xc6   : > { %v1029_v14 = vmul.f32 0.0, %v2443_v13 }
  0xc7   : > { %v2908_v15 = vpop.permute.xlu1 %1050 }
  0xc8   : > { %v1060_v16 = vmul.f32 %v2878_v63, %v1029_v14  ;;  %v1057_v17 = vmul.f32 %v2862_v55, %v1029_v14  ;;  %v1063_v22 = vmul.f32 %v2908_v15, %v1029_v14  ;;  %v1066_v25 = vmul.f32 %v2868_v58, %v1029_v14 }
  0xca   : > { %1087 = vrot.lane.b32.xlu0 %v1060_v16, %s2609_s22  ;;  %1081 = vrot.lane.b32.xlu1 %v1057_v17, %s2609_s22  ;;  %v553_v30 = vpop.permute.xlu0 %552 }
  0xcc   : > { %v2916_v19 = vpop.permute.xlu1 %1248 }
  0xce   : > { %982 = vrot.lane.b32.xlu0 %v949_v20, %s2608_s20  ;;  %976 = vrot.lane.b32.xlu1 %v946_v21, %s2608_s20  ;;  %v558_v34 = vpop.permute.xlu0 %557 }
  0xd0   : > { %v2925_v24 = vpop.permute.xlu1 %1252 }
  0xd2   : > { %1099 = vrot.lane.b32.xlu0 %v1066_v25, %s2609_s22  ;;  %1093 = vrot.lane.b32.xlu1 %v1063_v22, %s2609_s22  ;;  %v563_v40 = vpop.permute.xlu0 %562 }
  0xd5   : > { %v2932_v27 = vpop.permute.xlu1 %1151 }
  0xd6   : > { %v595_v50 = vpop.permute.xlu0 %594 }
  0xda   : > { %v2934_v29 = vpop.permute.xlu1 %1366 }
  0xdb   : > { %v1383_v42 = vmul.f32 %v2934_v29, %v2944_v36 }
  0xde   : > { %v2936_v31 = vpop.permute.xlu1 %2451 }
  0xdf   : > { %v2454_v33 = vunpack.i.h.bf16 %v2936_v31 }
  0xe1   : > { %v1237_v35 = vmul.f32 0.0, %v2454_v33 }
  0xe2   : > { %v2948_v39 = vpop.permute.xlu1 %1256 }
  0xe3   : > { %v1268_v37 = vmul.f32 %v2925_v24, %v1237_v35  ;;  %v1265_v38 = vmul.f32 %v2916_v19, %v1237_v35  ;;  %v1271_v8 = vmul.f32 %v2948_v39, %v1237_v35  ;;  %v1274_v20 = vmul.f32 %v2883_v2, %v1237_v35 }
  0xe5   : > { %1297 = vrot.lane.b32.xlu0 %v1268_v37, %s2610_s23  ;;  %1291 = vrot.lane.b32.xlu1 %v1265_v38, %s2610_s23 }
  0xe7   : > { %v2958_v43 = vpop.permute.xlu1 %1463 }
  0xe8   : > { %v1480_v35 = vmul.f32 0.0, %v2958_v43 }
  0xe9   : > { %1415 = vrot.lane.b32.xlu0 %v1386_v41, %s2611_s24  ;;  %1409 = vrot.lane.b32.xlu1 %v1383_v42, %s2611_s24 }
  0xeb   : > { %v2968_v21 = vpop.permute.xlu1 %1467 }
  0xec   : > { %v527_v56 = vpop.f32.mrb[0].mxu0  ;;  %v537_v5 = vpop.f32.mrb[0].mxu1 }
  0xed   : > { %1688 = vperm.xlu0 %2474, %v1678_v44   ;;  %1683 = vperm.xlu1 %2476, %v1677_v45   ;;  %v570_v3 = vmul.f32 %v553_v30, %v527_v56  ;;  %v529_v6 = vpop.f32.mrb[1].mxu0  ;;  %v574_v9 = vmul.f32 %v563_v40, %v537_v5  ;;  %v539_v16 = vpop.f32.mrb[1].mxu1 }
  0xee   : > { %v571_v14 = vmul.f32 %v553_v30, %v529_v6  ;;  %v531_v17 = vpop.f32.mrb[2].mxu0  ;;  %v575_v25 = vmul.f32 %v563_v40, %v539_v16  ;;  %v541_v38 = vpop.f32.mrb[2].mxu1  ;;  %v1483_v30 = vmul.f32 0.0, %v2968_v21  ;;  %v1713_v16 = vld [vmem:[%s3890_s6] sm:$0xff] }
  0xef   : > { %v602_v22 = vadd.f32 %v2841_v46, %v570_v3  ;;  %v572_v37 = vmul.f32 %v558_v34, %v531_v17  ;;  %v606_v41 = vadd.f32 %v595_v50, %v574_v9  ;;  %v533_v44 = vpop.f32.mrb[3].mxu0  ;;  %v543_v45 = vpop.f32.mrb[3].mxu1  ;;  %v576_v6 = vmul.f32 %v2853_v51, %v541_v38 }
  0xf0   : > { %v2972_v42 = vadd.f32 %v2841_v46, %v571_v14  ;;  %v607_v5 = vadd.f32 %v595_v50, %v575_v25  ;;  %v573_v14 = vmul.f32 %v558_v34, %v533_v44 }
  0xf1   : > { %1309 = vrot.lane.b32.xlu0 %v1274_v20, %s2610_s23  ;;  %v2316_v56 = vmul.f32 -1.442695, %v602_v22  ;;  %1303 = vrot.lane.b32.xlu1 %v1271_v8, %s2610_s23  ;;  %v2320_v3 = vmul.f32 -1.442695, %v606_v41  ;;  %v2981_v9 = vadd.f32 %v2847_v48, %v572_v37  ;;  %v2986_v50 = vadd.f32 %v2858_v53, %v576_v6 }
  0xf2   : > { %v2317_v40 = vmul.f32 -1.442695, %v2972_v42  ;;  %v2321_v46 = vmul.f32 -1.442695, %v607_v5  ;;  %v577_v8 = vmul.f32 %v2853_v51, %v543_v45  ;;  %v2994_v34 = vadd.f32 %v2847_v48, %v573_v14 }
  0xf3   : > { %2482 = vpow2.f32 %v2316_v56  ;;  %v2318_v17 = vmul.f32 -1.442695, %v2981_v9  ;;  %v2322_v20 = vmul.f32 -1.442695, %v2986_v50 }
  0xf4   : > { %2484 = vpow2.f32 %v2320_v3  ;;  %v2998_v25 = vadd.f32 %v2858_v53, %v577_v8  ;;  %v2319_v37 = vmul.f32 -1.442695, %v2994_v34 }
  0xf5   : > { %1512 = vrot.lane.b32.xlu0 %v1483_v30, %s2612_s16  ;;  %2486 = vpow2.f32 %v2317_v40  ;;  %1506 = vrot.lane.b32.xlu1 %v1480_v35, %s2612_s16 }
  0xf6   : > { %2488 = vpow2.f32 %v2321_v46  ;;  %v2323_v45 = vmul.f32 -1.442695, %v2998_v25 }
  0xf7   : > { %2490 = vpow2.f32 %v2318_v17 }
  0xf8   : > { %2492 = vpow2.f32 %v2322_v20 }
  0xf9   : > { %1719 = vperm.xlu1 %2476, %v1713_v16   ;;  %2494 = vpow2.f32 %v2319_v37  ;;  %v3003_v16 = vunpack.i.l.bf16 %v2901_v11 }
  0xfd   : > { %v2483_v38 = vpop.eup %2482 }
  0xfe   : > { %v2485_v51 = vpop.eup %2484  ;;  %v634_v44 = vadd.f32 1.0, %v2483_v38 }
  0xff   : > { %v2487_v30 = vpop.eup %2486  ;;  %v638_v56 = vadd.f32 1.0, %v2485_v51 }
 0x100   : > { %v2489_v48 = vpop.eup %2488  ;;  %2496 = vrcp.f32 %v634_v44  ;;  %v635_v35 = vadd.f32 1.0, %v2487_v30 }
 0x101   : > { %2498 = vrcp.f32 %v638_v56  ;;  %v639_v3 = vadd.f32 1.0, %v2489_v48  ;;  %v2491_v53 = vpop.eup %2490 }
 0x102   : > { %2500 = vpow2.f32 %v2323_v45  ;;  %v2493_v40 = vpop.eup %2492  ;;  %v636_v6 = vadd.f32 1.0, %v2491_v53 }
 0x103   : > { %2502 = vrcp.f32 %v639_v3  ;;  %v2495_v46 = vpop.eup %2494  ;;  %v640_v20 = vadd.f32 1.0, %v2493_v40 }
 0x104   : > { %2504 = vrcp.f32 %v635_v35  ;;  %v637_v44 = vadd.f32 1.0, %v2495_v46  ;;  %v3021_v35 = vsel %vm1348_vm6, %v3003_v16, %v2463_v32 }
 0x105   : > { %2506 = vrcp.f32 %v636_v6  ;;  %v3042_v6 = vpop.permute.xlu1 %1374 }
 0x106   : > { %2508 = vrcp.f32 %v640_v20 }
 0x107   : > { %2510 = vrcp.f32 %v637_v44 }
 0x10a   : > { %v2497_v14 = vpop.eup %2496 }
 0x10b   : > { %v2499_v8 = vpop.eup %2498  ;;  %v3005_v17 = vmul.f32 %v2497_v14, %v602_v22  ;;  %v3016_v22 = vunpack.i.h.bf16 %v2880_v0 }
 0x10c   : > { %v2501_v37 = vpop.eup %2500  ;;  %v3007_v51 = vmul.f32 %v2499_v8, %v606_v41  ;;  %v3026_v41 = vunpack.i.h.bf16 %v2903_v12 }
 0x10d   : > { %v2503_v38 = vpop.eup %2502  ;;  %v1154_v45 = vmul.f32 %v2897_v10, %v3005_v17  ;;  %v821_v30 = vmul.f32 %v2843_v47, %v3005_v17  ;;  %v641_v3 = vadd.f32 1.0, %v2501_v37  ;;  %v908_v40 = vsel %vm907_vm7, %v2435_v1, %v3016_v22 }
 0x10e   : > { %v2505_v56 = vpop.eup %2504  ;;  %v3013_v48 = vmul.f32 %v2503_v38, %v607_v5  ;;  %v1158_v11 = vmul.f32 %v2876_v62, %v3007_v51  ;;  %v827_v32 = vmul.f32 %v2870_v59, %v3007_v51  ;;  %v913_v46 = vmul.f32 %v908_v40, %v3005_v17 }
 0x10f   : > { %1170 = vrot.lane.b32.xlu1 %v1154_v45, %s2607_s18  ;;  %846 = vrot.lane.b32.xlu0 %v821_v30, %s2603_s19  ;;  %v3033_v53 = vmul.f32 %v2505_v56, %v2972_v42  ;;  %v1025_v42 = vsel %vm868_vm8, %v2443_v13, %v3026_v41  ;;  %2512 = vrcp.f32 %v641_v3  ;;  %v1478_v14 = vmul.f32 %v2958_v43, %v3005_v17  ;;  %v2507_v20 = vpop.eup %2506  ;;  %v3061_v13 = vpop.permute.xlu1 %1581 }
 0x110   : > { %v3030_v5 = vmul.f32 %v3021_v35, %v3013_v48  ;;  %v1030_v1 = vmul.f32 %v1025_v42, %v3005_v17  ;;  %v919_v8 = vmul.f32 %v908_v40, %v3007_v51  ;;  %v3058_v37 = vunpack.i.l.bf16 %v2936_v31  ;;  %v2509_v38 = vpop.eup %2508 }
 0x111   : > { %v1155_v0 = vmul.f32 %v2897_v10, %v3033_v53  ;;  %v1036_v12 = vmul.f32 %v1025_v42, %v3007_v51  ;;  %v1159_v10 = vmul.f32 %v2876_v62, %v3013_v48  ;;  %v822_v44 = vmul.f32 %v2843_v47, %v3033_v53  ;;  %v2511_v56 = vpop.eup %2510 }
 0x112   : > { %v1231_v45 = vsel %vm1230_vm9, %v3058_v37, %v2454_v33  ;;  %v3073_v30 = vmul.f32 %v2507_v20, %v2981_v9  ;;  %v3081_v62 = vmul.f32 %v2509_v38, %v2986_v50  ;;  %v1479_v47 = vmul.f32 %v2958_v43, %v3033_v53 }
 0x113   : > { %1178 = vrot.lane.b32.xlu1 %v1158_v11, %s2607_s18  ;;  %858 = vrot.lane.b32.xlu0 %v827_v32, %s2603_s19  ;;  %v3078_v3 = vmul.f32 %v1231_v45, %v3033_v53  ;;  %v3083_v11 = vpop.permute.xlu1 %1585  ;;  %v828_v31 = vmul.f32 %v2870_v59, %v3013_v48  ;;  %v3091_v33 = vmul.f32 %v3021_v35, %v3033_v53 }
 0x114   : > { %v3094_v32 = vmul.f32 %v2511_v56, %v2994_v34  ;;  %v3100_v50 = vmul.f32 %v908_v40, %v3073_v30  ;;  %v3105_v59 = vmul.f32 %v1025_v42, %v3073_v30  ;;  %v3108_v43 = vmul.f32 %v908_v40, %v3081_v62 }
 0x115   : > { %v941_v34 = vmul.f32 %v2866_v57, %v913_v46  ;;  %v824_v20 = vmul.f32 %v2860_v54, %v3073_v30  ;;  %v3117_v38 = vmul.f32 %v1025_v42, %v3081_v62  ;;  %v1058_v40 = vmul.f32 %v2862_v55, %v1030_v1 }
 0x116   : > { %v830_v46 = vmul.f32 %v2874_v61, %v3081_v62  ;;  %v947_v1 = vmul.f32 %v2856_v52, %v919_v8  ;;  %v1481_v8 = vmul.f32 %v2968_v21, %v3073_v30 }
 0x117   : > { %1502 = vrot.lane.b32.xlu1 %v1478_v14, %s2612_s16  ;;  %1172 = vrot.lane.b32.xlu0 %v1155_v0, %s2607_s18  ;;  %v3097_v14 = vmul.f32 %v1231_v45, %v3013_v48 }
 0x119   : > { %v2513_v9 = vpop.eup %2512 }
 0x11a   : > { %v3111_v0 = vmul.f32 %v2513_v9, %v2998_v25  ;;  %v3128_v25 = vmul.f32 %v3021_v35, %v3094_v32  ;;  %v1235_v9 = vmul.f32 %v3058_v37, %v3005_v17 }
 0x11b   : > { %1180 = vrot.lane.b32.xlu0 %v1159_v10, %s2607_s18  ;;  %848 = vrot.lane.b32.xlu1 %v822_v44, %s2603_s19  ;;  %v3120_v10 = vmul.f32 %v1231_v45, %v3094_v32  ;;  %v3122_v44 = vpop.permute.xlu1 %1475 }
 0x11c   : > { %v3134_v42 = vmul.f32 %v1231_v45, %v3111_v0  ;;  %v3138_v56 = vmul.f32 %v3021_v35, %v3111_v0  ;;  %v1156_v45 = vmul.f32 %v2872_v60, %v3073_v30  ;;  %v1064_v35 = vmul.f32 %v2908_v15, %v1036_v12 }
 0x11f   : > { %1504 = vrot.lane.b32.xlu0 %v1479_v47, %s2612_s16  ;;  %860 = vrot.lane.b32.xlu1 %v828_v31, %s2603_s19  ;;  %v3142_v47 = vmul.f32 %v3003_v16, %v3081_v62  ;;  %v3146_v31 = vpop.permute.xlu1 %2469 }
 0x123   : > { %966 = vrot.lane.b32.xlu0 %v941_v34, %s2608_s20  ;;  %852 = vrot.lane.b32.xlu1 %v824_v20, %s2603_s19  ;;  %v1263_v34 = vmul.f32 %v2916_v19, %v1235_v9  ;;  %v3157_v20 = vpop.permute.xlu1 %1593  ;;  %v1241_v9 = vmul.f32 %v3058_v37, %v3007_v51 }
 0x127   : > { %1083 = vrot.lane.b32.xlu0 %v1058_v40, %s2609_s22  ;;  %864 = vrot.lane.b32.xlu1 %v830_v46, %s2603_s19  ;;  %v1160_v40 = vmul.f32 %v2932_v27, %v3081_v62  ;;  %v1353_v46 = vmul.f32 %v3003_v16, %v3005_v17  ;;  %v3169_v12 = vpop.permute.xlu1 %762 }
 0x12b   : > { %978 = vrot.lane.b32.xlu0 %v947_v1, %s2608_s20  ;;  %1174 = vrot.lane.b32.xlu1 %v1156_v45, %s2607_s18  ;;  %v1381_v1 = vmul.f32 %v2934_v29, %v1353_v46  ;;  %v825_v45 = vmul.f32 %v2860_v54, %v3094_v32  ;;  %v1157_v46 = vmul.f32 %v2872_v60, %v3094_v32 }
 0x12f   : > { %1095 = vrot.lane.b32.xlu0 %v1064_v35, %s2609_s22  ;;  %1287 = vrot.lane.b32.xlu1 %v1263_v34, %s2610_s23  ;;  %v1269_v35 = vmul.f32 %v2948_v39, %v1241_v9  ;;  %v831_v34 = vmul.f32 %v2874_v61, %v3111_v0  ;;  %v3194_v61 = vpop.permute.xlu0 %767 }
 0x133   : > { %1508 = vrot.lane.b32.xlu0 %v1481_v8, %s2612_s16  ;;  %1182 = vrot.lane.b32.xlu1 %v1160_v40, %s2607_s18  ;;  %v914_v8 = vmul.f32 %v3016_v22, %v3033_v53  ;;  %v3183_v40 = vpop.permute.xlu1 %2478 }
 0x135   : > { %v942_v54 = vmul.f32 %v2866_v57, %v914_v8  ;;  %v920_v57 = vmul.f32 %v3016_v22, %v3013_v48  ;;  %v1161_v8 = vmul.f32 %v2932_v27, %v3111_v0  ;;  %v1482_v27 = vmul.f32 %v2968_v21, %v3094_v32 }
 0x136   : > { %v1356_v21 = vmul.f32 %v3003_v16, %v3073_v30 }
 0x137   : > { %1405 = vrot.lane.b32.xlu1 %v1381_v1, %s2611_s24  ;;  %854 = vrot.lane.b32.xlu0 %v825_v45, %s2603_s19  ;;  %v1031_v1 = vmul.f32 %v3026_v41, %v3033_v53  ;;  %v3196_v45 = vpop.permute.xlu1 %772 }
 0x139   : > { %v1059_v9 = vmul.f32 %v2862_v55, %v1031_v1  ;;  %v1037_v55 = vmul.f32 %v3026_v41, %v3013_v48  ;;  %v1270_v1 = vmul.f32 %v2948_v39, %v3097_v14 }
 0x13b   : > { %1299 = vrot.lane.b32.xlu1 %v1269_v35, %s2610_s23  ;;  %866 = vrot.lane.b32.xlu0 %v831_v34, %s2603_s19  ;;  %v1264_v35 = vmul.f32 %v2916_v19, %v3078_v3  ;;  %v3205_v60 = vpop.permute.xlu1 %844  ;;  %v948_v34 = vmul.f32 %v2856_v52, %v920_v57  ;;  %v1065_v3 = vmul.f32 %v2908_v15, %v1037_v55 }
 0x13c   : > { %v1061_v57 = vmul.f32 %v2878_v63, %v3105_v59  ;;  %v917_v59 = vmul.f32 %v3016_v22, %v3094_v32 }
 0x13f   : > { %968 = vrot.lane.b32.xlu1 %v942_v54, %s2608_s20  ;;  %1176 = vrot.lane.b32.xlu0 %v1157_v46, %s2607_s18  ;;  %v3212_v54 = vpop.permute.xlu0 %777  ;;  %v3216_v19 = vpop.permute.xlu1 %964  ;;  %v1382_v46 = vmul.f32 %v2934_v29, %v3091_v33  ;;  %v944_v29 = vmul.f32 %v2849_v49, %v3100_v50  ;;  %v1244_v50 = vmul.f32 %v3058_v37, %v3081_v62 }
 0x143   : > { %1085 = vrot.lane.b32.xlu1 %v1059_v9, %s2609_s22  ;;  %1289 = vrot.lane.b32.xlu0 %v1264_v35, %s2610_s23  ;;  %v3221_v52 = vpop.permute.xlu0 %850  ;;  %v1238_v9 = vmul.f32 %v3058_v37, %v3073_v30  ;;  %v3231_v35 = vpop.permute.xlu1 %856 }
 0x145   : > { %v1266_v33 = vmul.f32 %v2925_v24, %v1238_v9  ;;  %v1034_v9 = vmul.f32 %v3026_v41, %v3094_v32 }
 0x147   : > { %980 = vrot.lane.b32.xlu1 %v948_v34, %s2608_s20  ;;  %1184 = vrot.lane.b32.xlu0 %v1161_v8, %s2607_s18  ;;  %v3235_v15 = vpop.permute.xlu0 %970  ;;  %v3242_v39 = vpop.permute.xlu1 %1081  ;;  %v1384_v34 = vmul.f32 %v2893_v7, %v1356_v21  ;;  %v1062_v21 = vmul.f32 %v2878_v63, %v1034_v9  ;;  %v1359_v63 = vmul.f32 %v3003_v16, %v3007_v51 }
 0x14b   : > { %1097 = vrot.lane.b32.xlu1 %v1065_v3, %s2609_s22  ;;  %1407 = vrot.lane.b32.xlu0 %v1382_v46, %s2611_s24  ;;  %v3246_v14 = vpop.permute.xlu0 %862  ;;  %v3257_v55 = vpop.permute.xlu1 %976  ;;  %v950_v3 = vmul.f32 %v2887_v4, %v3108_v43  ;;  %v1272_v46 = vmul.f32 %v2883_v2, %v1244_v50  ;;  %v1040_v50 = vmul.f32 %v3026_v41, %v3111_v0  ;;  %v1714_v41 = vld [vmem:[%s3890_s6 + $0x8] sm:$0xff] }
 0x14f   : > { %1510 = vrot.lane.b32.xlu1 %v1482_v27, %s2612_s16  ;;  %1301 = vrot.lane.b32.xlu0 %v1270_v1, %s2610_s23  ;;  %v3255_v8 = vpop.permute.xlu0 %1087  ;;  %v3266_v37 = vpop.permute.xlu1 %1093  ;;  %v1067_v27 = vmul.f32 %v2868_v58, %v3117_v38  ;;  %v945_v1 = vmul.f32 %v2849_v49, %v917_v59  ;;  %v923_v38 = vmul.f32 %v3016_v22, %v3111_v0  ;;  %v2472_v59 = vunpack.i.h.bf16 %v3146_v31 }
 0x153   : > { %972 = vrot.lane.b32.xlu1 %v944_v29, %s2608_s20  ;;  %1293 = vrot.lane.b32.xlu0 %v1266_v33, %s2610_s23  ;;  %v3273_v43 = vpop.permute.xlu0 %982  ;;  %v1267_v33 = vmul.f32 %v2925_v24, %v3120_v10  ;;  %v1273_v10 = vmul.f32 %v2883_v2, %v3134_v42  ;;  %v1389_v2 = vmul.f32 %v3042_v6, %v2944_v36  ;;  %v3320_v42 = vunpack.i.l.bf16 %v3146_v31 }
 0x154   : > { %v1392_v31 = vmul.f32 %v2912_v18, %v2944_v36 }
 0x157   : > { %1089 = vrot.lane.b32.xlu1 %v1061_v57, %s2609_s22  ;;  %1411 = vrot.lane.b32.xlu0 %v1384_v34, %s2611_s24  ;;  %v3277_v29 = vpop.permute.xlu1 %1291  ;;  %v3286_v49 = vpop.permute.xlu0 %1099  ;;  %v1385_v57 = vmul.f32 %v2893_v7, %v3128_v25  ;;  %v951_v34 = vmul.f32 %v2887_v4, %v923_v38  ;;  %v1068_v7 = vmul.f32 %v2868_v58, %v1040_v50 }
 0x158   : > { %v1387_v25 = vmul.f32 %v3042_v6, %v1359_v63  ;;  %v1388_v58 = vmul.f32 %v3042_v6, %v3030_v5  ;;  %v1391_v5 = vmul.f32 %v2912_v18, %v3138_v56  ;;  %v1390_v6 = vmul.f32 %v2912_v18, %v3142_v47 }
 0x159   : > { %v1571_v50 = vmul.f32 %v3320_v42, %v3073_v30 }
 0x15b   : > { %984 = vrot.lane.b32.xlu1 %v950_v3, %s2608_s20  ;;  %1305 = vrot.lane.b32.xlu0 %v1272_v46, %s2610_s23  ;;  %v3293_v24 = vpop.permute.xlu1 %1409  ;;  %v3299_v22 = vpop.permute.xlu0 %1297 }
 0x15f   : > { %1101 = vrot.lane.b32.xlu1 %v1067_v27, %s2609_s22  ;;  %974 = vrot.lane.b32.xlu0 %v945_v1, %s2608_s20  ;;  %v3312_v16 = vpop.permute.xlu0 %1415  ;;  %v1568_v27 = vmul.f32 %v3320_v42, %v3005_v17  ;;  %v3337_v1 = vsel %vm1563_vm10, %v3320_v42, %v2472_v59 }
 0x161   : > { %v1596_v47 = vmul.f32 %v3061_v13, %v1568_v27 }
 0x163   : > { %1295 = vrot.lane.b32.xlu1 %v1267_v33, %s2610_s23  ;;  %1091 = vrot.lane.b32.xlu0 %v1062_v21, %s2609_s22  ;;  %v1569_v33 = vmul.f32 %v3337_v1, %v3033_v53  ;;  %v3350_v21 = vmul.f32 0.0, %v2472_v59 }
 0x165   : > { %v1598_v18 = vmul.f32 %v3061_v13, %v3350_v21  ;;  %v1597_v36 = vmul.f32 %v3061_v13, %v1569_v33  ;;  %v2480_v13 = vunpack.i.l.bf16 %v3183_v40 }
 0x167   : > { %1413 = vrot.lane.b32.xlu1 %v1385_v57, %s2611_s24  ;;  %986 = vrot.lane.b32.xlu0 %v951_v34, %s2608_s20  ;;  %s2613_s20 = smov 94   ;;  %v1572_v34 = vmul.f32 %v3337_v1, %v3094_v32 }
 0x16b   : > { %1307 = vrot.lane.b32.xlu1 %v1273_v10, %s2610_s23  ;;  %1103 = vrot.lane.b32.xlu0 %v1068_v7, %s2609_s22  ;;  %v1600_v7 = vmul.f32 %v3083_v11, %v1572_v34 }
 0x16c   : > { %v3304_v4 = vpop.permute.xlu1 %1683  ;;  %v3324_v46 = vpop.permute.xlu0 %1688 }
 0x16d   : > { %3905 = vst [vmem:[#allocation3_spill] sm:$0xff] %v3324_v46 }
 0x16f   : > { %1417 = vrot.lane.b32.xlu1 %v1387_v25, %s2611_s24  ;;  %1724 = vperm.xlu0 %2474, %v1714_v41   ;;  %v1599_v41 = vmul.f32 %v3083_v11, %v1571_v50  ;;  %v3372_v25 = vunpack.i.h.bf16 %v3183_v40  ;;  %v1680_v40 = vld [vmem:[%s3889_s5 + $0x18] sm:$0xff] }
 0x170   : > { %v3322_v3 = vpop.permute.xlu1 %1303  ;;  %v3345_v56 = vpop.permute.xlu0 %1309 }
 0x171   : > { %v746_v27 = vmul.f32 %v3372_v25, %v3033_v53  ;;  %v1486_v53 = vmul.f32 0.0, %v2923_v23 }
 0x173   : > { %1421 = vrot.lane.b32.xlu1 %v1389_v2, %s2611_s24  ;;  %1419 = vrot.lane.b32.xlu0 %v1388_v58, %s2611_s24  ;;  %v1679_v58 = vld [vmem:[%s3889_s5 + $0x10] sm:$0xff] }
 0x174   : > { %v3339_v9 = vpop.permute.xlu1 %1506  ;;  %v3356_v57 = vpop.permute.xlu0 %1512 }
 0x177   : > { %1425 = vrot.lane.b32.xlu1 %v1391_v5, %s2611_s24  ;;  %1423 = vrot.lane.b32.xlu0 %v1390_v6, %s2611_s24  ;;  %v1601_v5 = vmul.f32 %v3083_v11, %v3350_v21  ;;  %v3386_v6 = vsel %vm739_vm11, %v2480_v13, %v3372_v25  ;;  %v1484_v11 = vmul.f32 %v2923_v23, %v3007_v51 }
 0x178   : > { %v3354_v38 = vpop.permute.xlu1 %1719  ;;  %v745_v33 = vmul.f32 %v3386_v6, %v3005_v17  ;;  %v751_v17 = vmul.f32 %v3386_v6, %v3007_v51 }
 0x17a   : > { %v781_v50 = vmul.f32 %v3169_v12, %v745_v33  ;;  %v787_v28 = vmul.f32 %v3196_v45, %v751_v17 }
 0x17b   : > { %1620 = vrot.lane.b32.xlu1 %v1596_v47, %s2613_s20  ;;  %1427 = vrot.lane.b32.xlu0 %v1392_v31, %s2611_s24  ;;  %s467_s24 = scalar_lea.vmem %s3898_s14, %s2354_s21 }
 0x17f   : > { %1624 = vrot.lane.b32.xlu1 %v1598_v18, %s2613_s20  ;;  %1622 = vrot.lane.b32.xlu0 %v1597_v36, %s2613_s20  ;;  %v782_v18 = vmul.f32 %v3169_v12, %v746_v27  ;;  %v752_v36 = vmul.f32 %v3372_v25, %v3013_v48 }
 0x181   : > { %v3367_v63 = vpop.permute.xlu1 %1170  ;;  %v847_v10 = vpop.permute.xlu0 %846  ;;  %v788_v27 = vmul.f32 %v3196_v45, %v752_v36  ;;  %v1715_v36 = vld [vmem:[%s3890_s6 + $0x10] sm:$0xff] }
 0x183   : > { %1628 = vrot.lane.b32.xlu1 %v1600_v7, %s2613_s20  ;;  %1626 = vrot.lane.b32.xlu0 %v1599_v41, %s2613_s20  ;;  %v1485_v41 = vmul.f32 %v2923_v23, %v3013_v48  ;;  %v1488_v23 = vmul.f32 %v3122_v44, %v3111_v0 }
 0x185   : > { %v3380_v2 = vpop.permute.xlu1 %1178  ;;  %v859_v59 = vpop.permute.xlu0 %858 }
 0x187   : > { %1693 = vperm.xlu1 %2476, %v1679_v58   ;;  %1630 = vrot.lane.b32.xlu0 %v1601_v5, %s2613_s20 }
 0x189   : > { %v3394_v31 = vpop.permute.xlu1 %1502  ;;  %v3396_v47 = vpop.permute.xlu0 %1172 }
 0x18b   : > { %1514 = vrot.lane.b32.xlu1 %v1484_v11, %s2612_s16  ;;  %1698 = vperm.xlu0 %2474, %v1680_v40   ;;  %v1487_v11 = vmul.f32 %v3122_v44, %v3081_v62 }
 0x18d   : > { %v3407_v34 = vpop.permute.xlu0 %1180  ;;  %v849_v7 = vpop.permute.xlu1 %848 }
 0x18e   : > { %v870_v58 = vsel %vm868_vm8, %v847_v10, %v849_v7  ;;  %v3415_v5 = vadd.f32 %v849_v7, %v782_v18 }
 0x18f   : > { %v3417_v40 = vadd.f32 %v870_v58, %v781_v50  ;;  %1518 = vrot.lane.b32.xlu1 %v1486_v53, %s2612_s16  ;;  %1516 = vrot.lane.b32.xlu0 %v1485_v41, %s2612_s16  ;;  %v1489_v41 = vmul.f32 0.0, %v3122_v44 }
 0x191   : > { %v3426_v33 = vpop.permute.xlu0 %1504  ;;  %v861_v18 = vpop.permute.xlu1 %860 }
 0x192   : > { %v874_v50 = vsel %vm868_vm8, %v859_v59, %v861_v18  ;;  %v3430_v7 = vadd.f32 %v861_v18, %v788_v27  ;;  %v1574_v27 = vmul.f32 %v3320_v42, %v3007_v51  ;;  %v1575_v18 = vmul.f32 %v3337_v1, %v3013_v48 }
 0x193   : > { %v3432_v53 = vadd.f32 %v874_v50, %v787_v28  ;;  %1522 = vrot.lane.b32.xlu1 %v1488_v23, %s2612_s16  ;;  %1520 = vrot.lane.b32.xlu0 %v1487_v11, %s2612_s16  ;;  %v1716_v28 = vld [vmem:[%s3890_s6 + $0x18] sm:$0xff]  ;;  %v3457_v50 = vmul.f32 0.0, %v2480_v13  ;;  %v869_v51 = vsel %vm868_vm8, %v3205_v60, %v847_v10  ;;  %v873_v48 = vsel %vm868_vm8, %v3231_v35, %v859_v59 }
 0x194   : > { %v1602_v44 = vmul.f32 %v2930_v26, %v1574_v27  ;;  %v1578_v13 = vmul.f32 %v3337_v1, %v3111_v0 }
 0x195   : > { %v3440_v58 = vpop.permute.xlu0 %966  ;;  %v3442_v17 = vpop.permute.xlu1 %852  ;;  %v780_v27 = vmul.f32 %v3169_v12, %v3457_v50  ;;  %v786_v60 = vmul.f32 %v3196_v45, %v3457_v50  ;;  %v1603_v12 = vmul.f32 %v2930_v26, %v1575_v18 }
 0x196   : > { %v989_v10 = vsel %vm988_vm12, %v3216_v19, %v3440_v58  ;;  %v1606_v46 = vmul.f32 %v3157_v20, %v1578_v13 }
 0x197   : > { %1729 = vperm.xlu1 %2476, %v1715_v36   ;;  %1524 = vrot.lane.b32.xlu0 %v1489_v41, %s2612_s16  ;;  %v1604_v36 = vmul.f32 %v2930_v26, %v3350_v21  ;;  %v1577_v41 = vmul.f32 %v3320_v42, %v3081_v62  ;;  %v895_v59 = vadd.f32 %v873_v48, %v786_v60 }
 0x198   : > { %v748_v60 = vmul.f32 %v3386_v6, %v3073_v30 }
 0x199   : > { %v3450_v11 = vpop.permute.xlu0 %1083  ;;  %v3452_v23 = vpop.permute.xlu1 %864  ;;  %v1605_v1 = vmul.f32 %v3157_v20, %v1577_v41 }
 0x19a   : > { %v1106_v45 = vsel %vm1105_vm13, %v3242_v39, %v3450_v11  ;;  %v749_v39 = vmul.f32 %v3372_v25, %v3094_v32  ;;  %v755_v32 = vmul.f32 %v3372_v25, %v3111_v0 }
 0x19b   : > { %1632 = vrot.lane.b32.xlu1 %v1602_v44, %s2613_s20  ;;  %1734 = vperm.xlu0 %2474, %v1716_v28   ;;  %v889_v44 = vadd.f32 %v869_v51, %v780_v27 }
 0x19c   : > { %v791_v0 = vmul.f32 %v3212_v54, %v755_v32 }
 0x19d   : > { %v3477_v28 = vpop.permute.xlu0 %978  ;;  %v3479_v42 = vpop.permute.xlu1 %1174  ;;  %v1009_v19 = vadd.f32 %v989_v10, %v889_v44  ;;  %v785_v10 = vmul.f32 %v3194_v61, %v749_v39  ;;  %v754_v44 = vmul.f32 %v3386_v6, %v3081_v62 }
 0x19e   : > { %v993_v35 = vsel %vm988_vm12, %v3257_v55, %v3477_v28 }
 0x19f   : > { %1636 = vrot.lane.b32.xlu1 %v1604_v36, %s2613_s20  ;;  %1634 = vrot.lane.b32.xlu0 %v1603_v12, %s2613_s20  ;;  %v1015_v26 = vadd.f32 %v993_v35, %v895_v59  ;;  %v1126_v27 = vadd.f32 %v1106_v45, %v1009_v19  ;;  %v1607_v36 = vmul.f32 %v3157_v20, %v3350_v21 }
 0x1a0   : > { %v784_v20 = vmul.f32 %v3194_v61, %v748_v60 }
 0x1a1   : > { %v3492_v18 = vpop.permute.xlu0 %1095  ;;  %v1288_v51 = vpop.permute.xlu1 %1287 }
 0x1a2   : > { %v1110_v55 = vsel %vm1105_vm13, %v3266_v37, %v3492_v18  ;;  %v1202_v37 = vadd.f32 %v3367_v63, %v1126_v27 }
 0x1a3   : > { %v1132_v48 = vadd.f32 %v1110_v55, %v1015_v26  ;;  %1640 = vrot.lane.b32.xlu1 %v1606_v46, %s2613_s20  ;;  %1638 = vrot.lane.b32.xlu0 %v1605_v1, %s2613_s20  ;;  %v790_v1 = vmul.f32 %v3212_v54, %v754_v44 }
 0x1a4   : > { %v1332_v46 = vadd.f32 %v1288_v51, %v1202_v37 }
 0x1a5   : > { %v3503_v41 = vpop.permute.xlu0 %1508  ;;  %v3505_v13 = vpop.permute.xlu1 %1182  ;;  %v1208_v19 = vadd.f32 %v3380_v2, %v1132_v48 }
 0x1a7   : > { %1642 = vrot.lane.b32.xlu0 %v1607_v36, %s2613_s20 }
 0x1a9   : > { %v1406_v12 = vpop.permute.xlu1 %1405  ;;  %v855_v21 = vpop.permute.xlu0 %854 }
 0x1aa   : > { %v3517_v35 = vadd.f32 %v1406_v12, %v1332_v46  ;;  %v872_v30 = vsel %vm868_vm8, %v3442_v17, %v855_v21  ;;  %v3521_v59 = vadd.f32 %v855_v21, %v785_v10 }
 0x1ab   : > { %v3523_v45 = vadd.f32 %v872_v30, %v784_v20 }
 0x1ad   : > { %v1300_v25 = vpop.permute.xlu1 %1299  ;;  %v867_v26 = vpop.permute.xlu0 %866 }
 0x1ae   : > { %v3528_v27 = vadd.f32 %v1300_v25, %v1208_v19  ;;  %v876_v62 = vsel %vm868_vm8, %v3452_v23, %v867_v26  ;;  %v3532_v6 = vadd.f32 %v867_v26, %v791_v0 }
 0x1af   : > { %v3534_v55 = vadd.f32 %v876_v62, %v790_v1 }
 0x1b1   : > { %v969_v39 = vpop.permute.xlu1 %968  ;;  %v3536_v36 = vpop.permute.xlu0 %1176 }
 0x1b2   : > { %v990_v48 = vsel %vm988_vm12, %v3440_v58, %v969_v39  ;;  %v1011_v60 = vadd.f32 %v969_v39, %v3415_v5  ;;  %v3544_v37 = vsel %vm739_vm11, %v3479_v42, %v3536_v36  ;;  %v1186_v58 = vsel %vm739_vm11, %v3367_v63, %v3396_v47 }
 0x1b3   : > { %v1010_v46 = vadd.f32 %v990_v48, %v3417_v40 }
 0x1b5   : > { %v1086_v10 = vpop.permute.xlu1 %1085  ;;  %v1290_v32 = vpop.permute.xlu0 %1289 }
 0x1b6   : > { %v1107_v20 = vsel %vm1105_vm13, %v3450_v11, %v1086_v10  ;;  %v1128_v21 = vadd.f32 %v1086_v10, %v1011_v60  ;;  %v1312_v40 = vsel %vm1311_vm14, %v1288_v51, %v1290_v32 }
 0x1b7   : > { %v1127_v44 = vadd.f32 %v1107_v20, %v1010_v46 }
 0x1b8   : > { %v1204_v5 = vadd.f32 %v3396_v47, %v1128_v21  ;;  %v1313_v47 = vsel %vm1311_vm14, %v1290_v32, %v3277_v29  ;;  %v1188_v29 = vsel %vm739_vm11, %v3380_v2, %v3407_v34  ;;  %v1527_v32 = vsel %vm1526_vm0, %v3394_v31, %v3426_v33 }
 0x1b9   : > { %v1203_v30 = vadd.f32 %v1186_v58, %v1127_v44  ;;  %v981_v19 = vpop.permute.xlu1 %980  ;;  %v3553_v0 = vpop.permute.xlu0 %1184  ;;  %v871_v2 = vsel %vm868_vm8, %v3221_v52, %v3442_v17 }
 0x1ba   : > { %v994_v1 = vsel %vm988_vm12, %v3477_v28, %v981_v19  ;;  %v1017_v11 = vadd.f32 %v981_v19, %v3430_v7  ;;  %v3562_v26 = vsel %vm739_vm11, %v3505_v13, %v3553_v0  ;;  %v1334_v39 = vadd.f32 %v1313_v47, %v1204_v5 }
 0x1bb   : > { %v1333_v62 = vadd.f32 %v1312_v40, %v1203_v30  ;;  %v1016_v63 = vadd.f32 %v994_v1, %v3432_v53 }
 0x1bd   : > { %v1098_v51 = vpop.permute.xlu1 %1097  ;;  %v1408_v48 = vpop.permute.xlu0 %1407 }
 0x1be   : > { %v1111_v28 = vsel %vm1105_vm13, %v3492_v18, %v1098_v51  ;;  %v1134_v7 = vadd.f32 %v1098_v51, %v1017_v11  ;;  %v1430_v60 = vsel %vm1429_vm15, %v1406_v12, %v1408_v48  ;;  %v1431_v46 = vsel %vm1429_vm15, %v1408_v48, %v3293_v24 }
 0x1bf   : > { %v1133_v10 = vadd.f32 %v1111_v28, %v1016_v63  ;;  %v1451_v20 = vadd.f32 %v1430_v60, %v1333_v62  ;;  %v1452_v53 = vadd.f32 %v1431_v46, %v1334_v39  ;;  %v1528_v18 = vsel %vm1526_vm0, %v3426_v33, %v3339_v9 }
 0x1c0   : > { %v1210_v12 = vadd.f32 %v3407_v34, %v1134_v7  ;;  %v783_v33 = vmul.f32 %v3194_v61, %v3457_v50 }
 0x1c1   : > { %v3582_v21 = vpop.permute.xlu1 %1510  ;;  %v1209_v24 = vadd.f32 %v1188_v29, %v1133_v10  ;;  %v1302_v44 = vpop.permute.xlu0 %1301  ;;  %v3584_v58 = vadd.f32 %v1527_v32, %v1451_v20  ;;  %v3586_v5 = vadd.f32 %v1528_v18, %v1452_v53 }
 0x1c2   : > { %v1529_v30 = vsel %vm1526_vm0, %v3503_v41, %v3582_v21  ;;  %v1316_v9 = vsel %vm1311_vm14, %v1300_v25, %v1302_v44  ;;  %v1317_v34 = vsel %vm1311_vm14, %v1302_v44, %v3322_v3  ;;  %v892_v1 = vadd.f32 %v871_v2, %v783_v33 }
 0x1c3   : > { %v3599_v19 = vadd.f32 %v1316_v9, %v1209_v24  ;;  %v3601_v40 = vadd.f32 %v1317_v34, %v1210_v12  ;;  %v875_v3 = vsel %vm868_vm8, %v3246_v14, %v3452_v23  ;;  %v789_v25 = vmul.f32 %v3212_v54, %v3457_v50 }
 0x1c5   : > { %v973_v11 = vpop.permute.xlu1 %972  ;;  %v1294_v62 = vpop.permute.xlu0 %1293  ;;  %v898_v51 = vadd.f32 %v875_v3, %v789_v25 }
 0x1c6   : > { %v991_v52 = vsel %vm988_vm12, %v3235_v15, %v973_v11 }
 0x1c7   : > { %v1012_v17 = vadd.f32 %v991_v52, %v892_v1 }
 0x1c9   : > { %v1090_v63 = vpop.permute.xlu1 %1089  ;;  %v1412_v47 = vpop.permute.xlu0 %1411 }
 0x1ca   : > { %v1108_v61 = vsel %vm1105_vm13, %v3255_v8, %v1090_v63 }
 0x1cb   : > { %v1129_v39 = vadd.f32 %v1108_v61, %v1012_v17 }
 0x1cd   : > { %v1205_v48 = vadd.f32 %v3479_v42, %v1129_v39  ;;  %v985_v28 = vpop.permute.xlu1 %984  ;;  %v1306_v7 = vpop.permute.xlu0 %1305 }
 0x1ce   : > { %v995_v15 = vsel %vm988_vm12, %v3273_v43, %v985_v28 }
 0x1cf   : > { %v1335_v60 = vadd.f32 %v1294_v62, %v1205_v48  ;;  %v1018_v46 = vadd.f32 %v995_v15, %v898_v51 }
 0x1d1   : > { %v1453_v10 = vadd.f32 %v1412_v47, %v1335_v60  ;;  %v1102_v20 = vpop.permute.xlu1 %1101  ;;  %v975_v14 = vpop.permute.xlu0 %974 }
 0x1d2   : > { %v1112_v8 = vsel %vm1105_vm13, %v3286_v49, %v1102_v20  ;;  %v992_v23 = vsel %vm988_vm12, %v973_v11, %v975_v14  ;;  %v1014_v53 = vadd.f32 %v975_v14, %v3521_v59 }
 0x1d3   : > { %v1135_v54 = vadd.f32 %v1112_v8, %v1018_v46  ;;  %v1013_v50 = vadd.f32 %v992_v23, %v3523_v45  ;;  %v3620_v42 = vadd.f32 %v3503_v41, %v1453_v10 }
 0x1d5   : > { %v1211_v43 = vadd.f32 %v3505_v13, %v1135_v54  ;;  %v1296_v29 = vpop.permute.xlu1 %1295  ;;  %v1092_v32 = vpop.permute.xlu0 %1091 }
 0x1d6   : > { %v1314_v18 = vsel %vm1311_vm14, %v1294_v62, %v1296_v29  ;;  %v1109_v12 = vsel %vm1105_vm13, %v1090_v63, %v1092_v32  ;;  %v1131_v24 = vadd.f32 %v1092_v32, %v1014_v53  ;;  %v1315_v41 = vsel %vm1311_vm14, %v1296_v29, %v3299_v22 }
 0x1d7   : > { %v1130_v49 = vadd.f32 %v1109_v12, %v1013_v50  ;;  %v3626_v44 = vadd.f32 %v1306_v7, %v1211_v43 }
 0x1d8   : > { %v1207_v2 = vadd.f32 %v3536_v36, %v1131_v24 }
 0x1d9   : > { %v1206_v45 = vadd.f32 %v3544_v37, %v1130_v49  ;;  %v1414_v59 = vpop.permute.xlu1 %1413  ;;  %v987_v9 = vpop.permute.xlu0 %986  ;;  %v1530_v37 = vsel %vm1526_vm0, %v3582_v21, %v3356_v57 }
 0x1da   : > { %v1337_v13 = vadd.f32 %v1315_v41, %v1207_v2  ;;  %v1432_v34 = vsel %vm1429_vm15, %v1412_v47, %v1414_v59  ;;  %v1433_v33 = vsel %vm1429_vm15, %v1414_v59, %v3312_v16  ;;  %v996_v1 = vsel %vm988_vm12, %v985_v28, %v987_v9 }
 0x1db   : > { %v1336_v11 = vadd.f32 %v1314_v18, %v1206_v45  ;;  %v1019_v62 = vadd.f32 %v996_v1, %v3534_v55  ;;  %v1020_v36 = vadd.f32 %v987_v9, %v3532_v6 }
 0x1dc   : > { %v1455_v52 = vadd.f32 %v1433_v33, %v1337_v13 }
 0x1dd   : > { %v1454_v17 = vadd.f32 %v1432_v34, %v1336_v11  ;;  %v1308_v22 = vpop.permute.xlu1 %1307  ;;  %v1104_v63 = vpop.permute.xlu0 %1103 }
 0x1de   : > { %v1318_v47 = vsel %vm1311_vm14, %v1306_v7, %v1308_v22  ;;  %v1113_v3 = vsel %vm1105_vm13, %v1102_v20, %v1104_v63  ;;  %v1137_v16 = vadd.f32 %v1104_v63, %v1020_v36  ;;  %v3643_v39 = vadd.f32 %v1530_v37, %v1455_v52 }
 0x1df   : > { %v1136_v61 = vadd.f32 %v1113_v3, %v1019_v62  ;;  %v1551_v25 = vadd.f32 %v1529_v30, %v1454_v17  ;;  %v1319_v6 = vsel %vm1311_vm14, %v1308_v22, %v3345_v56  ;;  %v1547_v30 = vadd.f32 %v3394_v31, %v3517_v35 }
 0x1e0   : > { %v1213_v55 = vadd.f32 %v3553_v0, %v1137_v16 }
 0x1e1   : > { %v1212_v51 = vadd.f32 %v3562_v26, %v1136_v61  ;;  %v3649_v48 = vpop.permute.xlu1 %1417 }
 0x1e2   : > { %v1343_v28 = vadd.f32 %v1319_v6, %v1213_v55  ;;  %v1456_v61 = vadd.f32 %v3649_v48, %v3528_v27  ;;  %v3906_v55 = vld [vmem:[#allocation3_spill] sm:$0xff] }
 0x1e3   : > { %v3651_v57 = vadd.f32 %v1318_v47, %v1212_v51 }
 0x1e5   : > { %v1422_v21 = vpop.permute.xlu1 %1421 }
 0x1e9   : > { %v3653_v7 = vpop.permute.xlu1 %1425 }
 0x1ed   : > { %v1621_v15 = vpop.permute.xlu1 %1620 }
 0x1ee   : > { %v1665_v60 = vadd.f32 %v1621_v15, %v1547_v30  ;;  %v3657_v46 = vpop.permute.xlu0 %1724 }
 0x1f0   : > { %v1701_v0 = vmul.f32 %v3304_v4, %v1665_v60 }
 0x1f1   : > { %v1625_v23 = vpop.permute.xlu1 %1624 }
 0x1f2   : > { %v1737_v56 = vadd.f32 %v3354_v38, %v1701_v0  ;;  %v1420_v26 = vpop.permute.xlu0 %1419 }
 0x1f3   : > { %v1434_v51 = vsel %vm1429_vm15, %v3649_v48, %v1420_v26 }
 0x1f4   : > { %v2328_v10 = vmul.f32 -1.442695, %v1737_v56  ;;  %v1457_v48 = vadd.f32 %v1434_v51, %v3599_v19 }
 0x1f5   : > { %v1629_v18 = vpop.permute.xlu1 %1628 }
 0x1f6   : > { %2514 = vpow2.f32 %v2328_v10  ;;  %v3661_v20 = vpop.permute.xlu0 %1423 }
 0x1f7   : > { %v1436_v0 = vsel %vm1429_vm15, %v3661_v20, %v3653_v7 }
 0x1fa   : > { %v1428_v14 = vpop.permute.xlu0 %1427 }
 0x1fb   : > { %v1437_v8 = vsel %vm1429_vm15, %v3653_v7, %v1428_v14  ;;  %v1460_v7 = vadd.f32 %v1436_v0, %v3651_v57 }
 0x1fc   : > { %v3665_v54 = vadd.f32 %v1437_v8, %v1343_v28  ;;  %v1435_v28 = vsel %vm1429_vm15, %v1420_v26, %v1422_v21  ;;  %v1459_v26 = vadd.f32 %v3661_v20, %v3626_v44 }
 0x1fd   : > { %v1458_v21 = vadd.f32 %v1435_v28, %v3601_v40 }
 0x1fe   : > { %v1623_v31 = vpop.permute.xlu0 %1622 }
 0x1ff   : > { %v1645_v35 = vsel %vm1644_vm1, %v1621_v15, %v1623_v31  ;;  %v1646_v50 = vsel %vm1644_vm1, %v1623_v31, %v1625_v23 }
 0x200   : > { %v2515_v53 = vpop.eup %2514  ;;  %v1666_v43 = vadd.f32 %v1645_v35, %v3584_v58  ;;  %v1667_v29 = vadd.f32 %v1646_v50, %v3586_v5 }
 0x201   : > { %v1785_v32 = vadd.f32 1.0, %v2515_v53 }
 0x202   : > { %v1702_v12 = vmul.f32 %v3304_v4, %v1666_v43  ;;  %v1703_v24 = vmul.f32 %v3304_v4, %v1667_v29  ;;  %v1627_v49 = vpop.permute.xlu0 %1626 }
 0x203   : > { %2516 = vrcp.f32 %v1785_v32  ;;  %v1647_v17 = vsel %vm1644_vm1, %v1627_v49, %v1629_v18  ;;  %v1668_v63 = vadd.f32 %v1627_v49, %v3620_v42 }
 0x204   : > { %v3674_v2 = vadd.f32 %v3354_v38, %v1702_v12  ;;  %v3677_v41 = vadd.f32 %v3354_v38, %v1703_v24  ;;  %v1669_v37 = vadd.f32 %v1647_v17, %v1551_v25 }
 0x205   : > { %v1704_v6 = vmul.f32 %v3906_v55, %v1668_v63 }
 0x206   : > { %v2329_v45 = vmul.f32 -1.442695, %v3674_v2  ;;  %v2330_v58 = vmul.f32 -1.442695, %v3677_v41  ;;  %v3681_v59 = vpop.permute.xlu1 %1693  ;;  %v1631_v5 = vpop.permute.xlu0 %1630  ;;  %v1705_v15 = vmul.f32 %v3906_v55, %v1669_v37 }
 0x207   : > { %v1648_v47 = vsel %vm1644_vm1, %v1629_v18, %v1631_v5 }
 0x208   : > { %2518 = vpow2.f32 %v2329_v45  ;;  %v1670_v30 = vadd.f32 %v1648_v47, %v3643_v39  ;;  %v3710_v39 = vadd.f32 %v3657_v46, %v1704_v6  ;;  %v3718_v23 = vadd.f32 %v3657_v46, %v1705_v15 }
 0x209   : > { %2520 = vpow2.f32 %v2330_v58 }
 0x20a   : > { %v1515_v9 = vpop.permute.xlu1 %1514  ;;  %v3683_v13 = vpop.permute.xlu0 %1698  ;;  %v1706_v14 = vmul.f32 %v3906_v55, %v1670_v30  ;;  %v2331_v32 = vmul.f32 -1.442695, %v3710_v39  ;;  %v2332_v5 = vmul.f32 -1.442695, %v3718_v23 }
 0x20b   : > { %v1553_v42 = vadd.f32 %v1515_v9, %v1456_v61 }
 0x20c   : > { %v3730_v24 = vadd.f32 %v3657_v46, %v1706_v14 }
 0x20d   : > { %v2517_v4 = vpop.eup %2516 }
 0x20e   : > { %v1519_v34 = vpop.permute.xlu1 %1518  ;;  %v1517_v33 = vpop.permute.xlu0 %1516  ;;  %v3685_v1 = vmul.f32 %v2517_v4, %v1737_v56 }
 0x20f   : > { %v1531_v27 = vsel %vm1526_vm0, %v1515_v9, %v1517_v33  ;;  %v1532_v56 = vsel %vm1526_vm0, %v1517_v33, %v1519_v34 }
 0x210   : > { %1845 = vrot.lane.b32.xlu1 %v3685_v1, %s2606_s17  ;;  %v1554_v31 = vadd.f32 %v1531_v27, %v1457_v48  ;;  %v1555_v35 = vadd.f32 %v1532_v56, %v1458_v21 }
 0x212   : > { %v2519_v38 = vpop.eup %2518  ;;  %v1523_v11 = vpop.permute.xlu1 %1522 }
 0x213   : > { %v1521_v62 = vpop.permute.xlu0 %1520  ;;  %v2521_v52 = vpop.eup %2520  ;;  %v1786_v36 = vadd.f32 1.0, %v2519_v38 }
 0x214   : > { %v1787_v22 = vadd.f32 1.0, %v2521_v52  ;;  %v1533_v53 = vsel %vm1526_vm0, %v1521_v62, %v1523_v11  ;;  %v1556_v49 = vadd.f32 %v1521_v62, %v1459_v26 }
 0x215   : > { %2522 = vrcp.f32 %v1786_v36  ;;  %v1557_v9 = vadd.f32 %v1533_v53, %v1460_v7 }
 0x216   : > { %2524 = vrcp.f32 %v1787_v22  ;;  %v1730_v3 = vpop.permute.xlu1 %1729 }
 0x217   : > { %v1525_v16 = vpop.permute.xlu0 %1524 }
 0x218   : > { %v1534_v46 = vsel %vm1526_vm0, %v1523_v11, %v1525_v16 }
 0x219   : > { %v1558_v22 = vadd.f32 %v1534_v46, %v3665_v54 }
 0x21a   : > { %v1633_v25 = vpop.permute.xlu1 %1632 }
 0x21b   : > { %v3700_v60 = vpop.permute.xlu0 %1734  ;;  %v1671_v10 = vadd.f32 %v1633_v25, %v1553_v42 }
 0x21d   : > { %v1707_v8 = vmul.f32 %v3681_v59, %v1671_v10 }
 0x21e   : > { %v1637_v19 = vpop.permute.xlu1 %1636 }
 0x21f   : > { %v1635_v50 = vpop.permute.xlu0 %1634  ;;  %v2523_v40 = vpop.eup %2522  ;;  %v3721_v43 = vadd.f32 %v1730_v3, %v1707_v8 }
 0x220   : > { %v1649_v44 = vsel %vm1644_vm1, %v1633_v25, %v1635_v50  ;;  %v1650_v20 = vsel %vm1644_vm1, %v1635_v50, %v1637_v19  ;;  %v2525_v29 = vpop.eup %2524  ;;  %v3727_v12 = vmul.f32 %v2523_v40, %v3674_v2 }
 0x221   : > { %v1672_v57 = vadd.f32 %v1649_v44, %v1554_v31  ;;  %v1673_v18 = vadd.f32 %v1650_v20, %v1555_v35  ;;  %v2334_v45 = vmul.f32 -1.442695, %v3721_v43  ;;  %v3734_v58 = vmul.f32 %v2525_v29, %v3677_v41 }
 0x222   : > { %v1641_v33 = vpop.permute.xlu1 %1640  ;;  %1847 = vrot.lane.b32.xlu0 %v3727_v12, %s2606_s17 }
 0x223   : > { %v1708_v4 = vmul.f32 %v3681_v59, %v1672_v57  ;;  %v1709_v34 = vmul.f32 %v3681_v59, %v1673_v18  ;;  %v1639_v2 = vpop.permute.xlu0 %1638  ;;  %2526 = vpow2.f32 %v2334_v45  ;;  %1849 = vrot.lane.b32.xlu1 %v3734_v58, %s2606_s17  ;;  %v2333_v59 = vmul.f32 -1.442695, %v3730_v24 }
 0x224   : > { %v1651_v41 = vsel %vm1644_vm1, %v1639_v2, %v1641_v33  ;;  %v1674_v38 = vadd.f32 %v1639_v2, %v1556_v49  ;;  %2528 = vpow2.f32 %v2331_v32 }
 0x225   : > { %v1744_v62 = vadd.f32 %v1730_v3, %v1708_v4  ;;  %v1745_v52 = vadd.f32 %v1730_v3, %v1709_v34  ;;  %v1675_v36 = vadd.f32 %v1651_v41, %v1557_v9  ;;  %2530 = vpow2.f32 %v2332_v5 }
 0x226   : > { %v1710_v17 = vmul.f32 %v3683_v13, %v1674_v38 }
 0x227   : > { %v2335_v63 = vmul.f32 -1.442695, %v1744_v62  ;;  %v2336_v37 = vmul.f32 -1.442695, %v1745_v52  ;;  %v1711_v11 = vmul.f32 %v3683_v13, %v1675_v36  ;;  %v1643_v47 = vpop.permute.xlu0 %1642 }
 0x228   : > { %v3750_v16 = vadd.f32 %v3700_v60, %v1710_v17  ;;  %v1652_v61 = vsel %vm1644_vm1, %v1641_v33, %v1643_v47 }
 0x229   : > { %2532 = vpow2.f32 %v2335_v63  ;;  %v1747_v3 = vadd.f32 %v3700_v60, %v1711_v11  ;;  %v1676_v55 = vadd.f32 %v1652_v61, %v1558_v22 }
 0x22a   : > { %2534 = vpow2.f32 %v2336_v37  ;;  %v2337_v6 = vmul.f32 -1.442695, %v3750_v16 }
 0x22b   : > { %2536 = vpow2.f32 %v2333_v59  ;;  %v2338_v54 = vmul.f32 -1.442695, %v1747_v3  ;;  %v1712_v51 = vmul.f32 %v3683_v13, %v1676_v55 }
 0x22d   : > { %2538 = vpow2.f32 %v2338_v54  ;;  %v1748_v28 = vadd.f32 %v3700_v60, %v1712_v51  ;;  %v2527_v30 = vpop.eup %2526 }
 0x22e   : > { %v1791_v42 = vadd.f32 1.0, %v2527_v30  ;;  %2540 = vpow2.f32 %v2337_v6  ;;  %v2529_v25 = vpop.eup %2528  ;;  %v2614_v30 = vmov 0.0|0.0  }
 0x22f   : > { %v2339_v15 = vmul.f32 -1.442695, %v1748_v28  ;;  %v2531_v0 = vpop.eup %2530  ;;  %v1788_v10 = vadd.f32 1.0, %v2529_v25  ;;  %2385 = vmatprep.subr.bf16.mxu1 %v2614_v30 }
 0x230   : > { %2542 = vrcp.f32 %v1791_v42  ;;  %v1789_v26 = vadd.f32 1.0, %v2531_v0  ;;  %v3907_v42 = vmov 0.0  }
 0x231   : > { %2544 = vpow2.f32 %v2339_v15  ;;  %2374 = vmatprep.mubr.msk.f32.mxu1 %vm2615_vm2, %v3907_v42 }
 0x233   : > { %v2533_v27 = vpop.eup %2532 }
 0x234   : > { %v2535_v56 = vpop.eup %2534  ;;  %v1792_v48 = vadd.f32 1.0, %v2533_v27 }
 0x235   : > { %v2537_v21 = vpop.eup %2536  ;;  %v1793_v14 = vadd.f32 1.0, %v2535_v56 }
 0x236   : > { %2546 = vrcp.f32 %v1792_v48  ;;  %v1790_v60 = vadd.f32 1.0, %v2537_v21 }
 0x237   : > { %v2539_v13 = vpop.eup %2538  ;;  %2548 = vrcp.f32 %v1793_v14 }
 0x238   : > { %2550 = vrcp.f32 %v1788_v10  ;;  %v2541_v8 = vpop.eup %2540  ;;  %v1795_v7 = vadd.f32 1.0, %v2539_v13  ;;  %v1901_v13 = vld [vmem:[%s3891_s7] sm:$0x3] }
 0x239   : > { %2552 = vrcp.f32 %v1789_v26  ;;  %v1794_v35 = vadd.f32 1.0, %v2541_v8  ;;  %v1902_v8 = vld [vmem:[%s3892_s8] sm:$0x3] }
 0x23a   : > { %v2543_v31 = vpop.eup %2542  ;;  %2554 = vrcp.f32 %v1790_v60  ;;  %v1984_v60 = vld [vmem:[%s3893_s9] sm:$0xff] }
 0x23b   : > { %v3758_v19 = vmul.f32 %v2543_v31, %v3721_v43  ;;  %v2545_v50 = vpop.eup %2544  ;;  %2556 = vrcp.f32 %v1795_v7 }
 0x23c   : > { %2558 = vrcp.f32 %v1794_v35  ;;  %v1796_v53 = vadd.f32 1.0, %v2545_v50 }
 0x23d   : > { %1857 = vrot.lane.b32.xlu1 %v3758_v19, %s2606_s17 }
 0x23e   : > { %2560 = vrcp.f32 %v1796_v53 }
 0x240   : > { %v2547_v40 = vpop.eup %2546 }
 0x241   : > { %v2549_v44 = vpop.eup %2548  ;;  %v3762_v20 = vmul.f32 %v2547_v40, %v1744_v62 }
 0x242   : > { %v2551_v29 = vpop.eup %2550  ;;  %v3764_v32 = vmul.f32 %v2549_v44, %v1745_v52 }
 0x243   : > { %v2553_v57 = vpop.eup %2552  ;;  %1859 = vrot.lane.b32.xlu0 %v3762_v20, %s2606_s17  ;;  %v3771_v43 = vmul.f32 %v2551_v29, %v3710_v39 }
 0x244   : > { %1861 = vrot.lane.b32.xlu1 %v3764_v32, %s2606_s17  ;;  %v2555_v18 = vpop.eup %2554  ;;  %v3774_v49 = vmul.f32 %v2553_v57, %v3718_v23  ;;  %v1985_v57 = vld [vmem:[%s3893_s9 + $0x8] sm:$0xff] }
 0x245   : > { %v2557_v45 = vpop.eup %2556  ;;  %v3781_v5 = vmul.f32 %v2555_v18, %v3730_v24  ;;  %v1986_v18 = vld [vmem:[%s3893_s9 + $0x10] sm:$0xff] }
 0x246   : > { %v2559_v9 = vpop.eup %2558  ;;  %v3783_v4 = vmul.f32 %v2557_v45, %v1747_v3  ;;  %v1987_v45 = vld [vmem:[%s3893_s9 + $0x18] sm:$0xff] }
 0x247   : > { %1851 = vrot.lane.b32.xlu0 %v3771_v43, %s2606_s17  ;;  %v3790_v39 = vmul.f32 %v2559_v9, %v3750_v16  ;;  %v1989_v9 = vld [vmem:[%s3894_s10 + $0x8] sm:$0xff] }
 0x248   : > { %1853 = vrot.lane.b32.xlu1 %v3774_v49, %s2606_s17  ;;  %v2561_v23 = vpop.eup %2560 }
 0x249   : > { %v3794_v34 = vmul.f32 %v2561_v23, %v1748_v28  ;;  %v1988_v23 = vld [vmem:[%s3894_s10] sm:$0xff] }
 0x24b   : > { %1855 = vrot.lane.b32.xlu0 %v3781_v5, %s2606_s17 }
 0x24c   : > { %1865 = vrot.lane.b32.xlu1 %v3783_v4, %s2606_s17 }
 0x24f   : > { %1863 = vrot.lane.b32.xlu0 %v3790_v39, %s2606_s17 }
 0x253   : > { %1867 = vrot.lane.b32.xlu0 %v3794_v34, %s2606_s17 }
 0x282   : > { %v1846_v24 = vpop.permute.xlu1 %1845 }
 0x294   : > { %v1848_v33 = vpop.permute.xlu0 %1847 }
 0x295   : > { %v1850_v2 = vpop.permute.xlu1 %1849  ;;  %v1869_v46 = vsel %vm1563_vm10, %v1846_v24, %v1848_v33 }
 0x296   : > { %v1870_v41 = vsel %vm1563_vm10, %v1848_v33, %v1850_v2 }
 0x297   : > { %v1885_v38 = vadd.f32 %v1870_v41, %v1869_v46  ;;  %v1991_v41 = vld [vmem:[%s3894_s10 + $0x18] sm:$0xff] }
 0x299   : > { %1886 = vadd.xlane.f32.xlu1 %v1885_v38 }
 0x2af   : > { %v1858_v62 = vpop.permute.xlu1 %1857 }
 0x2b5   : > { %v1860_v52 = vpop.permute.xlu0 %1859 }
 0x2b6   : > { %v1862_v36 = vpop.permute.xlu1 %1861  ;;  %v1873_v47 = vsel %vm1563_vm10, %v1858_v62, %v1860_v52  ;;  %v1990_v62 = vld [vmem:[%s3894_s10 + $0x10] sm:$0xff] }
 0x2b7   : > { %v1874_v16 = vsel %vm1563_vm10, %v1860_v52, %v1862_v36 }
 0x2b8   : > { %v1891_v3 = vadd.f32 %v1874_v16, %v1873_v47 }
 0x2b9   : > { %v1852_v59 = vpop.permute.xlu0 %1851 }
 0x2ba   : > { %v1854_v17 = vpop.permute.xlu1 %1853 }
 0x2bb   : > { %v1871_v63 = vsel %vm1563_vm10, %v1852_v59, %v1854_v17 }
 0x2bd   : > { %v1856_v22 = vpop.permute.xlu0 %1855 }
 0x2be   : > { %v1872_v37 = vsel %vm1563_vm10, %v1854_v17, %v1856_v22  ;;  %v1866_v55 = vpop.permute.xlu1 %1865 }
 0x2bf   : > { %v1888_v11 = vadd.f32 %v1872_v37, %v1871_v63 }
 0x2c1   : > { %1889 = vadd.xlane.f32.xlu0 %v1888_v11  ;;  %v1864_v61 = vpop.permute.xlu0 %1863 }
 0x2c2   : > { %v1875_v54 = vsel %vm1563_vm10, %v1864_v61, %v1866_v55 }
 0x2c5   : > { %1892 = vadd.xlane.f32.xlu0 %v1891_v3  ;;  %v1868_v6 = vpop.permute.xlu0 %1867 }
 0x2c6   : > { %v1876_v51 = vsel %vm1563_vm10, %v1866_v55, %v1868_v6 }
 0x2c7   : > { %v1894_v28 = vadd.f32 %v1876_v51, %v1875_v54 }
 0x2c9   : > { %1895 = vadd.xlane.f32.xlu1 %v1894_v28 }
 0x326   : > { %v1887_v15 = vpop.xlane.xlu1 %1886 }
 0x327   : > { %v1897_v0 = vmul.f32 0.00390625, %v1887_v15 }
 0x34e   : > { %v1890_v25 = vpop.xlane.xlu0 %1889 }
 0x34f   : > { %v1898_v27 = vmul.f32 0.00390625, %v1890_v25 }
 0x351   : > { %v2386_v56 = vpack.c.bf16 %v1898_v27, %v1897_v0 }
 0x352   : > { %v1893_v10 = vpop.xlane.xlu0 %1892 }
 0x353   : > { %2387 = vmatpush3.bf16.msra.mxu1 %v2386_v56  ;;  %v1899_v21 = vmul.f32 0.00390625, %v1893_v10 }
 0x354   : > { %2388 = vmatprep.subr.bf16.mxu1 %v2614_v30 }
 0x356   : > { %v1896_v48 = vpop.xlane.xlu1 %1895 }
 0x357   : > { %v1900_v26 = vmul.f32 0.00390625, %v1896_v48 }
 0x359   : > { %v2389_v14 = vpack.c.bf16 %v1900_v26, %v1899_v21 }
 0x35b   : > { %2390 = vmatpush3.bf16.msra.mxu1 %v2389_v14 }
 0x35e   : > { %2375 = vmatmul.mubr.msk.f32.vlgmr.msra.gmra.mrb[4].mxu1 %vm1903_vm3, %v1901_v13 }
 0x35f   : > { %2379 = vmatprep.mubr.msk.f32.mxu1 %vm1992_vm4, %v1984_v60 }
 0x431   : > { %v1973_v7 = vpop.f32.mrb[4].mxu1 }
 0x432   : > { %v1974_v31 = vadd.f32 %v1973_v7, %v1902_v8  ;;  %v2376_v35 = vpop.f32.mrb[5].mxu1 }
 0x434   : > { %v2341_v50 = vmul.f32 -1.442695, %v1974_v31 }
 0x436   : > { %2562 = vpow2.f32 %v2341_v50 }
 0x440   : > { %v2563_v40 = vpop.eup %2562 }
 0x441   : > { %v1980_v53 = vadd.f32 1.0, %v2563_v40 }
 0x443   : > { %2564 = vrcp.f32 %v1980_v53  ;;  %v2150_v53 = vld [vmem:[%s3895_s11] sm:$0xff] }
 0x44d   : > { %v2565_v44 = vpop.eup %2564 }
 0x44e   : > { %v1983_v29 = vmul.f32 %v2565_v44, %v1974_v31 }
 0x450   : > { %2377 = vmatprep.subr.msk.mxu1 %vm2005_vm5, %v1983_v29 }
 0x451   : > { %2378 = vmatpush3.msk.msra.mxu1 %vm2005_vm5, %v1983_v29 }
 0x452   : > { %2380 = vmatmul.mubr.msk.f32.vlgmr.msra.gmra.mrb[6].mxu1 %vm1992_vm4, %v1985_v57 }
 0x453   : > { %2382 = vmatprep.mubr.msk.f32.mxu1 %vm1992_vm4, %v1986_v18 }
 0x456   : > { %2383 = vmatmul.mubr.msk.f32.gmra.mrb[8].mxu1 %vm1992_vm4, %v1987_v45  ;;  %v2151_v45 = vpack.c.bf16 %v2150_v53, %v2150_v53 }
 0x525   : > { %v2381_v24 = vpop.f32.mrb[6].mxu1 }
 0x526   : > { %v2081_v33 = vadd.f32 %v2381_v24, %v1989_v9  ;;  %v2075_v2 = vpop.f32.mrb[7].mxu1 }
 0x527   : > { %v2076_v46 = vadd.f32 %v2075_v2, %v1988_v23 }
 0x528   : > { %v2348_v38 = vmul.f32 -1.442695, %v2081_v33 }
 0x529   : > { %v2347_v52 = vmul.f32 -1.442695, %v2076_v46  ;;  %v2384_v36 = vpop.f32.mrb[8].mxu1 }
 0x52a   : > { %2566 = vpow2.f32 %v2348_v38  ;;  %v2091_v59 = vadd.f32 %v2384_v36, %v1991_v41  ;;  %v2085_v17 = vpop.f32.mrb[9].mxu1  ;;  %v2582_v36 = vld [vmem:[%s2728_s26] sm:$0xff] }
 0x52b   : > { %2568 = vpow2.f32 %v2347_v52  ;;  %v2086_v22 = vadd.f32 %v2085_v17, %v1990_v62  ;;  %v2583_v17 = vld [vmem:[%s2728_s26 + $0x8] sm:$0xff] }
 0x52c   : > { %v2350_v63 = vmul.f32 -1.442695, %v2091_v59 }
 0x52d   : > { %v2349_v37 = vmul.f32 -1.442695, %v2086_v22 }
 0x52e   : > { %2570 = vpow2.f32 %v2350_v63 }
 0x52f   : > { %2572 = vpow2.f32 %v2349_v37 }
 0x534   : > { %v2567_v11 = vpop.eup %2566 }
 0x535   : > { %v2569_v47 = vpop.eup %2568  ;;  %v2107_v16 = vadd.f32 1.0, %v2567_v11 }
 0x536   : > { %v2106_v61 = vadd.f32 1.0, %v2569_v47 }
 0x537   : > { %2574 = vrcp.f32 %v2107_v16 }
 0x538   : > { %v2571_v3 = vpop.eup %2570  ;;  %2576 = vrcp.f32 %v2106_v61 }
 0x539   : > { %v2573_v55 = vpop.eup %2572  ;;  %v2109_v6 = vadd.f32 1.0, %v2571_v3 }
 0x53a   : > { %v2108_v54 = vadd.f32 1.0, %v2573_v55 }
 0x53b   : > { %2578 = vrcp.f32 %v2109_v6 }
 0x53c   : > { %2580 = vrcp.f32 %v2108_v54 }
 0x541   : > { %v2575_v51 = vpop.eup %2574 }
 0x542   : > { %v2577_v28 = vpop.eup %2576  ;;  %2125 = vperm.xlu1 %2476, %v2575_v51  }
 0x543   : > { %2120 = vperm.xlu0 %2474, %v2577_v28  }
 0x545   : > { %v2579_v30 = vpop.eup %2578 }
 0x546   : > { %v2581_v42 = vpop.eup %2580 }
 0x547   : > { %2130 = vperm.xlu1 %2476, %v2581_v42   ;;  %2135 = vperm.xlu0 %2474, %v2579_v30  }
 0x5c1   : > { %v2126_v15 = vpop.permute.xlu1 %2125 }
 0x5c2   : > { %v2142_v25 = vmul.f32 %v2126_v15, %v3774_v49  ;;  %v2143_v0 = vmul.f32 %v2126_v15, %v3781_v5  ;;  %v2121_v27 = vpop.permute.xlu0 %2120  ;;  %v2141_v48 = vmul.f32 %v2126_v15, %v3771_v43 }
 0x5c3   : > { %v2139_v56 = vmul.f32 %v2121_v27, %v3727_v12  ;;  %v2140_v10 = vmul.f32 %v2121_v27, %v3734_v58  ;;  %v2138_v21 = vmul.f32 %v2121_v27, %v3685_v1 }
 0x5c5   : > { %v2153_v26 = vpack.c.bf16 %v2142_v25, %v2139_v56  ;;  %v2154_v14 = vpack.c.bf16 %v2143_v0, %v2140_v10  ;;  %v2152_v5 = vpack.c.bf16 %v2141_v48, %v2138_v21 }
 0x5c6   : > { %v2131_v13 = vpop.permute.xlu1 %2130  ;;  %v2136_v60 = vpop.permute.xlu0 %2135 }
 0x5c7   : > { %v2145_v8 = vmul.f32 %v2131_v13, %v3762_v20  ;;  %2168 = vrot.lane.b32.xlu0 %v2154_v14, %s2606_s17  ;;  %v2148_v49 = vmul.f32 %v2136_v60, %v3783_v4  ;;  %2166 = vrot.lane.b32.xlu1 %v2153_v26, %s2606_s17  ;;  %v2144_v12 = vmul.f32 %v2131_v13, %v3758_v19  ;;  %v2229_v19 = vld [vmem:[%s3896_s12] sm:$0xff] }
 0x5c8   : > { %v2146_v58 = vmul.f32 %v2131_v13, %v3764_v32  ;;  %v2147_v43 = vmul.f32 %v2136_v60, %v3790_v39  ;;  %v2149_v1 = vmul.f32 %v2136_v60, %v3794_v34  ;;  %v2237_v32 = vld [vmem:[%s3897_s13] sm:$0xff] }
 0x5c9   : > { %v2156_v7 = vpack.c.bf16 %v2148_v49, %v2145_v8 }
 0x5ca   : > { %v2155_v20 = vpack.c.bf16 %v2147_v43, %v2144_v12  ;;  %v2157_v31 = vpack.c.bf16 %v2149_v1, %v2146_v58 }
 0x5cb   : > { %2164 = vrot.lane.b32.xlu1 %v2152_v5, %s2606_s17  ;;  %2172 = vrot.lane.b32.xlu0 %v2156_v7, %s2606_s17 }
 0x5cf   : > { %2174 = vrot.lane.b32.xlu1 %v2157_v31, %s2606_s17  ;;  %2170 = vrot.lane.b32.xlu0 %v2155_v20, %s2606_s17 }
 0x5d3   : > { %2232 = vperm.xlu1 %2476, %v2229_v19   ;;  %2240 = vperm.xlu0 %2474, %v2237_v32  }
 0x639   : > { %v2169_v4 = vpop.permute.xlu0 %2168  ;;  %v2167_v39 = vpop.permute.xlu1 %2166 }
 0x63a   : > { %v2178_v34 = vsel %vm1563_vm10, %v2167_v39, %v2169_v4 }
 0x63b   : > { %2188 = vmatprep.subr.bf16.mxu0 %v2178_v34 }
 0x63d   : > { %v2165_v35 = vpop.permute.xlu1 %2164  ;;  %v2173_v50 = vpop.permute.xlu0 %2172 }
 0x63e   : > { %v2177_v40 = vsel %vm1563_vm10, %v2165_v35, %v2167_v39 }
 0x63f   : > { %2189 = vmatpush1.bf16.msra.mxu0 %v2177_v40 }
 0x641   : > { %v2175_v44 = vpop.permute.xlu1 %2174  ;;  %v2171_v29 = vpop.permute.xlu0 %2170 }
 0x642   : > { %v2179_v57 = vsel %vm1563_vm10, %v2171_v29, %v2173_v50  ;;  %v2180_v18 = vsel %vm1563_vm10, %v2173_v50, %v2175_v44 }
 0x643   : > { %2190 = vmatprep.subr.bf16.mxu0 %v2180_v18 }
 0x644   : > { %2191 = vmatpush1.bf16.msra.mxu0 %v2179_v57 }
 0x647   : > { %2351 = vmatmul.mubr.msk.bf16.vlgmr.msra.gmra.mrb[4].mxu0 %vm1903_vm3, %v2151_v45 }
 0x652   : > { %v2233_v9 = vpop.permute.xlu1 %2232  ;;  %v2241_v2 = vpop.permute.xlu0 %2240 }
 0x71a   : > { %v2222_v23 = vpop.f32.mrb[4].mxu0 }
 0x71b   : > { %v2235_v24 = vmul.f32 %v2233_v9, %v2222_v23  ;;  %v2224_v33 = vpop.f32.mrb[5].mxu0 }
 0x71c   : > { %v2236_v46 = vmul.f32 %v2233_v9, %v2224_v33  ;;  %v2226_v41 = vpop.f32.mrb[6].mxu0 }
 0x71d   : > { %v2243_v38 = vadd.f32 %v2241_v2, %v2235_v24  ;;  %v2227_v62 = vpop.f32.mrb[7].mxu0 }
 0x71e   : > { %v2244_v52 = vadd.f32 %v2241_v2, %v2236_v46 }
 0x71f   : > { %v2245_v59 = vadd.f32 %v2582_v36, %v2243_v38 }
 0x720   : > { %v2246_v22 = vadd.f32 %v2583_v17, %v2244_v52 }
 0x721   : > { %2247 = vst [vmem:[%s467_s24] sm:$0xff] %v2245_v59 }
 0x722   : > { %2248 = vst [vmem:[%s467_s24 + $0x8] sm:$0xff] %v2246_v22 }
 0x723 PF: > { %s24_s29 = sadd.s32 1, %s2590_s29  }
 0x724   : > { %p21_p4 = scmp.ge.s32.totalorder %s24_s29, 4  }
 0x726   :  { %23 = sbr.rel (!%p21_p4) target bundleno = 1 (0x1), region = 106 }

</bundles_post_ra>
